<compile_context>
chip_gen: v6e
topology: v6e:2x2x1
jax: 0.10.0
libtpu: 0.0.40
codegen_flags: <defaults>
</compile_context>

<pallas_src>
import jax
import jax.numpy as jnp
from jax.experimental import pallas as pl
from jax.experimental.pallas import tpu as pltpu

NUM_CLASSES = 10
NC_PAD = 128  # lane-dense class dimension


def mlp_kernel(x_ref, w1_ref, b1_ref, w2_ref, b2_ref, w3_ref, b3_ref, o_ref):
    # fc1 + ReLU (bf16 MXU matmul, f32 accumulate)
    x = x_ref[...]                                   # already bf16 (TM, 784)
    h1 = jnp.dot(x, w1_ref[...], preferred_element_type=jnp.float32)
    h1 = jnp.maximum(h1 + b1_ref[...], 0.0)
    # fc2 + ReLU
    h2 = jnp.dot(h1.astype(jnp.bfloat16), w2_ref[...],
                 preferred_element_type=jnp.float32)
    h2 = jnp.maximum(h2 + b2_ref[...], 0.0)
    # fc4 (logits), lane-dense 128-wide output
    logits = jnp.dot(h2.astype(jnp.bfloat16), w3_ref[...],
                     preferred_element_type=jnp.float32)
    logits = logits + b3_ref[...]
    # Mask padded class lanes (10..127) to a large negative BEFORE the
    # max/exp/sum so the 128-lane lse equals the 10-class lse.
    col = jax.lax.broadcasted_iota(jnp.int32, logits.shape, 1)
    logits = jnp.where(col < NUM_CLASSES, logits, jnp.float32(-1e30))
    m = jnp.max(logits, axis=-1, keepdims=True)
    shifted = logits - m
    lse = jnp.log(jnp.sum(jnp.exp(shifted), axis=-1, keepdims=True))
    o_ref[...] = (shifted - lse).astype(o_ref.dtype)


def _round_up(v, m):
    return ((v + m - 1) // m) * m


def net_forward(x, w1, b1, w2, b2, w3, b3, tm=512):
    """x: (B, 1, 28, 28) f32. Weights (in, out) f32; streamed/stored as bf16."""
    B = x.shape[0]
    # Stream activations in bf16 (binding HBM traffic at large batch).
    x2d = x.reshape(B, 28 * 28).astype(jnp.bfloat16)

    # Batch tile selection:
    #   - large default (amortize ~0.35us per-grid-step overhead),
    #   - but guarantee >= 2 grid steps when B >= 16 so both v7x TCs get work.
    if B >= 16:
        tm_target = _round_up(pl.cdiv(B, 2), 8)
    else:
        tm_target = _round_up(B, 8)
    TM = max(8, min(tm, tm_target))
    Bp = pl.cdiv(B, TM) * TM
    if Bp != B:
        x2d = jnp.pad(x2d, ((0, Bp - B), (0, 0)))

    # Weights streamed once as bf16; biases stay f32 (f32 accumulate in-kernel).
    w1b = w1.astype(jnp.bfloat16)
    w2b = w2.astype(jnp.bfloat16)
    # Lane-pad the class dim 10 -> 128 with zeros (kernel masks before softmax).
    w3p = jnp.pad(w3, ((0, 0), (0, NC_PAD - NUM_CLASSES))).astype(jnp.bfloat16)
    b3p = jnp.pad(b3, ((0, 0), (0, NC_PAD - NUM_CLASSES)))

    grid = (Bp // TM,)
    pinned = lambda arr: pl.BlockSpec(arr.shape, lambda i: (0, 0))

    flops = 2 * Bp * (784 * 512 + 512 * 512 + 512 * NUM_CLASSES)
    bytes_accessed = (
        x2d.size * 2                                   # bf16 activations
        + (w1b.size + w2b.size + w3p.size) * 2         # bf16 weights (once)
        + (b1.size + b2.size + b3p.size) * 4           # f32 biases
        + Bp * NC_PAD * 4                              # f32 output
    )
    cost = pl.CostEstimate(flops=flops,
                           transcendentals=Bp * NC_PAD,
                           bytes_accessed=bytes_accessed)

    out = pl.pallas_call(
        mlp_kernel,
        out_shape=jax.ShapeDtypeStruct((Bp, NC_PAD), jnp.float32),
        grid=grid,
        in_specs=[
            pl.BlockSpec((TM, 784), lambda i: (i, 0)),   # bf16 x tile (pipelined)
            pinned(w1b), pinned(b1),                     # weights/biases resident
            pinned(w2b), pinned(b2),
            pinned(w3p), pinned(b3p),
        ],
        out_specs=pl.BlockSpec((TM, NC_PAD), lambda i: (i, 0)),
        compiler_params=pltpu.CompilerParams(
            dimension_semantics=("parallel",),
            vmem_limit_bytes=48 * 1024 * 1024),
        cost_estimate=cost,
    )(x2d, w1b, b1, w2b, b2, w3p, b3p)

    return out[:B, :NUM_CLASSES]


def init_params(key):
    # Deterministic synthetic init (PyTorch-default-like uniform bounds).
    k1, k2, k3, k4, k5, k6 = jax.random.split(key, 6)

    def uniform(k, shape, fan_in):
        bound = 1.0 / (fan_in ** 0.5)
        return jax.random.uniform(k, shape, jnp.float32, -bound, bound)

    # Weights stored as (in_features, out_features) so the kernel does x @ W.
    w1 = uniform(k1, (784, 512), 784)
    b1 = uniform(k2, (1, 512), 784)
    w2 = uniform(k3, (512, 512), 512)
    b2 = uniform(k4, (1, 512), 512)
    w3 = uniform(k5, (512, 10), 512)
    b3 = uniform(k6, (1, 10), 512)
    return w1, b1, w2, b2, w3, b3


def _reference(x, w1, b1, w2, b2, w3, b3):
    # Pure-JAX reference mirroring the kernel's bf16-stream / f32-accumulate math.
    B = x.shape[0]
    xb = x.reshape(B, 784).astype(jnp.bfloat16)
    w1b, w2b, w3b = (w.astype(jnp.bfloat16) for w in (w1, w2, w3))
    h = jnp.dot(xb, w1b, preferred_element_type=jnp.float32)
    h = jnp.maximum(h + b1, 0.0)
    h = jnp.dot(h.astype(jnp.bfloat16), w2b, preferred_element_type=jnp.float32)
    h = jnp.maximum(h + b2, 0.0)
    logits = jnp.dot(h.astype(jnp.bfloat16), w3b,
                     preferred_element_type=jnp.float32) + b3
    return jax.nn.log_softmax(logits, axis=1)


if __name__ == "__main__":
    key = jax.random.PRNGKey(0)
    kx, kp = jax.random.split(key)
    params = init_params(kp)

    # Small primary check (B=8, single tile).
    B = 8
    x = jax.random.normal(kx, (B, 1, 28, 28), jnp.float32)  # NCHW, like MNIST
    out = jax.block_until_ready(net_forward(x, *params))
    ref = _reference(x, *params)
    assert out.shape == (B, 10)
    assert jnp.allclose(out, ref, atol=1e-3, rtol=1e-3)

    # Multi-tile / padded-batch check (exercises the >=2-step grid + padding +
    # class-lane-padding paths).
    B2 = 260
    x2 = jax.random.normal(kx, (B2, 1, 28, 28), jnp.float32)
    out2 = jax.block_until_ready(net_forward(x2, *params))
    ref2 = _reference(x2, *params)
    assert out2.shape == (B2, 10)
    assert jnp.allclose(out2, ref2, atol=1e-3, rtol=1e-3)

    print("KERNEL_OK")
</pallas_src>

<mosaic_0001>
module attributes {stable_mosaic.version = 11 : i64} {
  func.func @mlp_kernel(%arg0: i32, %arg1: memref<8x784xbf16, #tpu.memory_space<vmem>>, %arg2: memref<784x512xbf16, #tpu.memory_space<vmem>>, %arg3: memref<1x512xf32, #tpu.memory_space<vmem>>, %arg4: memref<512x512xbf16, #tpu.memory_space<vmem>>, %arg5: memref<1x512xf32, #tpu.memory_space<vmem>>, %arg6: memref<512x128xbf16, #tpu.memory_space<vmem>>, %arg7: memref<1x128xf32, #tpu.memory_space<vmem>>, %arg8: memref<8x128xf32, #tpu.memory_space<vmem>>) attributes {dimension_semantics = [#tpu.dimension_semantics<parallel>], iteration_bounds = array<i64: 1>, scalar_prefetch = 0 : i64, scratch_operands = 0 : i64, tpu.core_type = #tpu.core_type<tc>, window_params = [{transform_indices = @transform_0, window_bounds = array<i64: 8, 784>}, {pipeline_mode = #tpu.pipeline_mode<synchronous>, transform_indices = @transform_1, window_bounds = array<i64: 784, 512>}, {pipeline_mode = #tpu.pipeline_mode<synchronous>, transform_indices = @transform_2, window_bounds = array<i64: 1, 512>}, {pipeline_mode = #tpu.pipeline_mode<synchronous>, transform_indices = @transform_3, window_bounds = array<i64: 512, 512>}, {pipeline_mode = #tpu.pipeline_mode<synchronous>, transform_indices = @transform_4, window_bounds = array<i64: 1, 512>}, {pipeline_mode = #tpu.pipeline_mode<synchronous>, transform_indices = @transform_5, window_bounds = array<i64: 512, 128>}, {pipeline_mode = #tpu.pipeline_mode<synchronous>, transform_indices = @transform_6, window_bounds = array<i64: 1, 128>}, {transform_indices = @transform_7, window_bounds = array<i64: 8, 128>}]} {
    %c0 = arith.constant 0 : index
    %c0_0 = arith.constant 0 : index
    %0 = vector.load %arg1[%c0, %c0_0] : memref<8x784xbf16, #tpu.memory_space<vmem>>, vector<8x784xbf16>
    %c0_1 = arith.constant 0 : index
    %c0_2 = arith.constant 0 : index
    %1 = vector.load %arg2[%c0_1, %c0_2] : memref<784x512xbf16, #tpu.memory_space<vmem>>, vector<784x512xbf16>
    %cst = arith.constant dense<0.000000e+00> : vector<8x512xf32>
    %2 = tpu.matmul %0, %1, %cst {dimension_numbers = #tpu.dot_dimension_numbers<[1], [0], [0], [1], [0, 0, 1, 1], [], []>} : vector<8x784xbf16>, vector<784x512xbf16>, vector<8x512xf32> -> vector<8x512xf32>
    %c0_3 = arith.constant 0 : index
    %c0_4 = arith.constant 0 : index
    %3 = vector.load %arg3[%c0_3, %c0_4] : memref<1x512xf32, #tpu.memory_space<vmem>>, vector<1x512xf32>
    %4 = vector.broadcast %3 : vector<1x512xf32> to vector<8x512xf32>
    %5 = arith.addf %2, %4 : vector<8x512xf32>
    %cst_5 = arith.constant 0.000000e+00 : f32
    %6 = vector.broadcast %cst_5 : f32 to vector<8x512xf32>
    %7 = arith.maximumf %5, %6 : vector<8x512xf32>
    %8 = arith.truncf %7 : vector<8x512xf32> to vector<8x512xbf16>
    %c0_6 = arith.constant 0 : index
    %c0_7 = arith.constant 0 : index
    %9 = vector.load %arg4[%c0_6, %c0_7] : memref<512x512xbf16, #tpu.memory_space<vmem>>, vector<512x512xbf16>
    %cst_8 = arith.constant dense<0.000000e+00> : vector<8x512xf32>
    %10 = tpu.matmul %8, %9, %cst_8 {dimension_numbers = #tpu.dot_dimension_numbers<[1], [0], [0], [1], [0, 0, 1, 1], [], []>} : vector<8x512xbf16>, vector<512x512xbf16>, vector<8x512xf32> -> vector<8x512xf32>
    %c0_9 = arith.constant 0 : index
    %c0_10 = arith.constant 0 : index
    %11 = vector.load %arg5[%c0_9, %c0_10] : memref<1x512xf32, #tpu.memory_space<vmem>>, vector<1x512xf32>
    %12 = vector.broadcast %11 : vector<1x512xf32> to vector<8x512xf32>
    %13 = arith.addf %10, %12 : vector<8x512xf32>
    %cst_11 = arith.constant 0.000000e+00 : f32
    %14 = vector.broadcast %cst_11 : f32 to vector<8x512xf32>
    %15 = arith.maximumf %13, %14 : vector<8x512xf32>
    %16 = arith.truncf %15 : vector<8x512xf32> to vector<8x512xbf16>
    %c0_12 = arith.constant 0 : index
    %c0_13 = arith.constant 0 : index
    %17 = vector.load %arg6[%c0_12, %c0_13] : memref<512x128xbf16, #tpu.memory_space<vmem>>, vector<512x128xbf16>
    %cst_14 = arith.constant dense<0.000000e+00> : vector<8x128xf32>
    %18 = tpu.matmul %16, %17, %cst_14 {dimension_numbers = #tpu.dot_dimension_numbers<[1], [0], [0], [1], [0, 0, 1, 1], [], []>} : vector<8x512xbf16>, vector<512x128xbf16>, vector<8x128xf32> -> vector<8x128xf32>
    %c0_15 = arith.constant 0 : index
    %c0_16 = arith.constant 0 : index
    %19 = vector.load %arg7[%c0_15, %c0_16] : memref<1x128xf32, #tpu.memory_space<vmem>>, vector<1x128xf32>
    %20 = vector.broadcast %19 : vector<1x128xf32> to vector<8x128xf32>
    %21 = arith.addf %18, %20 : vector<8x128xf32>
    %22 = tpu.iota {dimensions = array<i32: 1>} : vector<8x128xi32>
    %c10_i32 = arith.constant 10 : i32
    %23 = vector.broadcast %c10_i32 : i32 to vector<8x128xi32>
    %24 = arith.cmpi slt, %22, %23 : vector<8x128xi32>
    %cst_17 = arith.constant -1.000000e+30 : f32
    %25 = vector.broadcast %cst_17 : f32 to vector<8x128xf32>
    %26 = arith.select %24, %21, %25 : vector<8x128xi1>, vector<8x128xf32>
    %cst_18 = arith.constant dense<0xFF800000> : vector<8xf32>
    %27 = vector.multi_reduction <maximumf>, %26, %cst_18 [1] : vector<8x128xf32> to vector<8xf32>
    %28 = vector.shape_cast %27 : vector<8xf32> to vector<8x1xf32>
    %29 = vector.broadcast %28 : vector<8x1xf32> to vector<8x128xf32>
    %30 = arith.subf %26, %29 : vector<8x128xf32>
    %31 = math.exp %30 : vector<8x128xf32>
    %cst_19 = arith.constant dense<0.000000e+00> : vector<8xf32>
    %32 = vector.multi_reduction <add>, %31, %cst_19 [1] : vector<8x128xf32> to vector<8xf32>
    %33 = vector.shape_cast %32 : vector<8xf32> to vector<8x1xf32>
    %34 = math.log %33 : vector<8x1xf32>
    %35 = vector.broadcast %34 : vector<8x1xf32> to vector<8x128xf32>
    %36 = arith.subf %30, %35 : vector<8x128xf32>
    %c0_20 = arith.constant 0 : index
    %c0_21 = arith.constant 0 : index
    %37 = vector.load %arg8[%c0_20, %c0_21] : memref<8x128xf32, #tpu.memory_space<vmem>>, vector<8x128xf32>
    tpu.vector_store %arg8[%c0_20, %c0_21], %36 {strides = array<i32>} : memref<8x128xf32, #tpu.memory_space<vmem>>, vector<8x128xf32>,
    return
  }
  func.func @transform_0(%arg0: i32) -> (i32, i32) {
    %c0_i32 = arith.constant 0 : i32
    %c0_i32_0 = arith.constant 0 : i32
    return %arg0, %c0_i32 : i32, i32
  }
  func.func @transform_1(%arg0: i32) -> (i32, i32) {
    %c0_i32 = arith.constant 0 : i32
    %c0_i32_0 = arith.constant 0 : i32
    %c0_i32_1 = arith.constant 0 : i32
    return %c0_i32, %c0_i32_0 : i32, i32
  }
  func.func @transform_2(%arg0: i32) -> (i32, i32) {
    %c0_i32 = arith.constant 0 : i32
    %c0_i32_0 = arith.constant 0 : i32
    %c0_i32_1 = arith.constant 0 : i32
    return %c0_i32, %c0_i32_0 : i32, i32
  }
  func.func @transform_3(%arg0: i32) -> (i32, i32) {
    %c0_i32 = arith.constant 0 : i32
    %c0_i32_0 = arith.constant 0 : i32
    %c0_i32_1 = arith.constant 0 : i32
    return %c0_i32, %c0_i32_0 : i32, i32
  }
  func.func @transform_4(%arg0: i32) -> (i32, i32) {
    %c0_i32 = arith.constant 0 : i32
    %c0_i32_0 = arith.constant 0 : i32
    %c0_i32_1 = arith.constant 0 : i32
    return %c0_i32, %c0_i32_0 : i32, i32
  }
  func.func @transform_5(%arg0: i32) -> (i32, i32) {
    %c0_i32 = arith.constant 0 : i32
    %c0_i32_0 = arith.constant 0 : i32
    %c0_i32_1 = arith.constant 0 : i32
    return %c0_i32, %c0_i32_0 : i32, i32
  }
  func.func @transform_6(%arg0: i32) -> (i32, i32) {
    %c0_i32 = arith.constant 0 : i32
    %c0_i32_0 = arith.constant 0 : i32
    %c0_i32_1 = arith.constant 0 : i32
    return %c0_i32, %c0_i32_0 : i32, i32
  }
  func.func @transform_7(%arg0: i32) -> (i32, i32) {
    %c0_i32 = arith.constant 0 : i32
    %c0_i32_0 = arith.constant 0 : i32
    return %arg0, %c0_i32 : i32, i32
  }
}

</mosaic_0001>

<bundles_post_ra>
// kernel: tpu_custom_call.1
= control target key start
LH: loop header
LB: loop body
LE: loop exit
PB: predicated region body
PF: predicated region fallthrough
CT: control target
= control target key end

     0   :  { %12 = vsyncpa [#allocation3], 0  ;;  %s4227_s0 = inlined_call_operand.hbm [shape: bf16[8,784], index: 0, kind: input, shape index: {}]   ;;  %s4228_s1 = inlined_call_operand.hbm [shape: bf16[784,512], index: 1, kind: input, shape index: {}]   ;;  %s4229_s2 = inlined_call_operand.hbm [shape: f32[1,512], index: 2, kind: input, shape index: {}]   ;;  %s4230_s3 = inlined_call_operand.hbm [shape: bf16[512,512], index: 3, kind: input, shape index: {}]   ;;  %s4231_s4 = inlined_call_operand.vmem [shape: f32[1,512], index: 4, kind: input, shape index: {}]   ;;  %s4232_s5 = inlined_call_operand.hbm [shape: bf16[512,128], index: 5, kind: input, shape index: {}]   ;;  %s4233_s6 = inlined_call_operand.vmem [shape: f32[1,128], index: 6, kind: input, shape index: {}]   ;;  %s4234_s7 = inlined_call_operand.hbm [shape: f32[8,128], index: 7, kind: output, shape index: {}]  }
   0x1   :  { %13 = vsyncpa [#allocation6], 0 }
   0x2   :  { %14 = vsyncpa [#allocation9], 0 }
   0x3   :  { %15 = vsyncpa [#allocation4], 0  ;;  %s4074_s24 = smov [#allocation5]  }
   0x4   :  { %s31_s25 = sshll.u32 %s4074_s24, 4  ;;  %s32_s25 = int_to_ptr.vmem [resolvable:$true] %s31_s25 }
   0x5   :  { %s3954_s26 = scalar_lea.vmem %s32_s25, 25088  ;;  %p3959_p1 = scmp.lt.s32.totalorder %s32_s25, %s32_s25 }
   0x6   :  { %p3955_p0 = scmp.ne.s32.totalorder %s32_s25, %s3954_s26  ;;  %p3960_p2 = scmp.lt.s32.totalorder %s3954_s26, %s3954_s26 }
   0x8   :  { %p3961_p3 = por %p3960_p2, %p3959_p1 }
   0xa   :  { %p3962_p4 = pnand %p3961_p3, %p3955_p0 }
   0xc   :  { %3965 = shalt.err (!%p3962_p4)
}
   0xd   :  { %s4075_s27 = smov 256   ;;  %s4076_s28 = smov 16  }
   0xe   :  { %37 = dma.hbm_to_vmem [thread:$0]  %s4228_s1, 25088, %s32_s25, [#allocation6], %s4075_s27, %s4075_s27, %s4076_s28  }
   0xf   :  { %s4077_s8 = smov [#allocation8]   ;;  %s4078_s10 = smov [#allocation2]  }
  0x10   :  { %s53_s9 = sshll.u32 %s4077_s8, 4  ;;  %s22_s11 = sshll.u32 %s4078_s10, 4  ;;  %s54_s9 = int_to_ptr.vmem [resolvable:$true] %s53_s9  ;;  %s23_s11 = int_to_ptr.vmem [resolvable:$true] %s22_s11 }
  0x11   :  { %s3974_s12 = scalar_lea.vmem %s54_s9, 16384  ;;  %p3979_p6 = scmp.lt.s32.totalorder %s54_s9, %s54_s9 }
  0x12   :  { %p3975_p5 = scmp.ne.s32.totalorder %s54_s9, %s3974_s12  ;;  %p3980_p7 = scmp.lt.s32.totalorder %s3974_s12, %s3974_s12 }
  0x14   :  { %p3981_p8 = por %p3980_p7, %p3979_p6 }
  0x16   :  { %p3982_p9 = pnand %p3981_p8, %p3975_p5 }
  0x18   :  { %3985 = shalt.err (!%p3982_p9)
}
  0x19   :  { %59 = dma.hbm_to_vmem [thread:$0]  %s4230_s3, 16384, %s54_s9, [#allocation9], %s4075_s27, %s4075_s27, %s4076_s28  }
  0x1a   :  { %s3994_s15 = scalar_lea.vmem %s23_s11, 448  ;;  %p3999_p11 = scmp.lt.s32.totalorder %s23_s11, %s23_s11 }
  0x1b   :  { %p3995_p10 = scmp.ne.s32.totalorder %s23_s11, %s3994_s15  ;;  %p4000_p12 = scmp.lt.s32.totalorder %s3994_s15, %s3994_s15 }
  0x1d   :  { %p4001_p13 = por %p4000_p12, %p3999_p11 }
  0x1f   :  { %p4002_p0 = pnand %p4001_p13, %p3995_p10 }
  0x21   :  { %4005 = shalt.err (!%p4002_p0)
}
  0x22   :  { %25 = dma.hbm_to_vmem [thread:$0]  %s4227_s0, 448, %s23_s11, [#allocation3]  }
  0x23   :  { %s4079_s17 = smov [#allocation7]   ;;  %s4080_s19 = smov [#allocation10]  }
  0x24   :  { %s44_s18 = sshll.u32 %s4079_s17, 4  ;;  %s67_s20 = sshll.u32 %s4080_s19, 4  ;;  %s45_s18 = int_to_ptr.vmem [resolvable:$true] %s44_s18  ;;  %s68_s20 = int_to_ptr.vmem [resolvable:$true] %s67_s20 }
  0x25   :  { %s4014_s21 = scalar_lea.vmem %s45_s18, 64  ;;  %p4019_p2 = scmp.lt.s32.totalorder %s45_s18, %s45_s18 }
  0x26   :  { %p4015_p1 = scmp.ne.s32.totalorder %s45_s18, %s4014_s21  ;;  %p4020_p3 = scmp.lt.s32.totalorder %s4014_s21, %s4014_s21 }
  0x28   :  { %p4021_p4 = por %p4020_p3, %p4019_p2 }
  0x2a   :  { %p4022_p5 = pnand %p4021_p4, %p4015_p1 }
  0x2c   :  { %4025 = shalt.err (!%p4022_p5)
}
  0x2d   :  { %47 = dma.hbm_to_vmem [thread:$0]  %s4229_s2, 64, %s45_s18, [#allocation6]  }
  0x2e   :  { %s4034_s23 = scalar_lea.vmem %s68_s20, 4096  ;;  %p4039_p7 = scmp.lt.s32.totalorder %s68_s20, %s68_s20 }
  0x2f   :  { %p4035_p6 = scmp.ne.s32.totalorder %s68_s20, %s4034_s23  ;;  %p4040_p8 = scmp.lt.s32.totalorder %s4034_s23, %s4034_s23 }
  0x31   :  { %p4041_p9 = por %p4040_p8, %p4039_p7 }
  0x33   :  { %p4042_p10 = pnand %p4041_p9, %p4035_p6 }
  0x35   :  { %4045 = shalt.err (!%p4042_p10)
}
  0x36   :  { %s4081_s0 = smov 64   ;;  %s4082_s24 = smov 4  }
  0x37   :  { %73 = dma.hbm_to_vmem [thread:$0]  %s4232_s5, 4096, %s68_s20, [#allocation9], %s4081_s0, %s4081_s0, %s4082_s24  }
  0x38   :  { %4066 = dma.done.wait [#allocation3], 448  }
  0x39   :  { %4067 = vsyncadd [#allocation3], 4294966848 }
  0x3a   :  { %4068 = dma.done.wait [#allocation6], 25152  }
  0x3b   :  { %4069 = vsyncadd [#allocation6], 4294942144 }
  0x3c   :  { %4070 = dma.done.wait [#allocation9], 20480  }
  0x3d   :  { %4071 = vsyncadd [#allocation9], 4294946816  ;;  %v3416_v0 = vld [vmem:[#allocation5 + $0xe4] ss:$16 sps:$4 sm:$0xff]   ;;  %v3420_v2 = vld [vmem:[#allocation5 + $0xe0] ss:$16 sps:$4 sm:$0xff]  }
  0x3e   :  { %v3418_v1 = vld [vmem:[#allocation5 + $0x2e4] ss:$16 sps:$4 sm:$0xff]   ;;  %1322 = vmatprep.subr.bf16.mxu0 %v3416_v0  ;;  %v3421_v3 = vld [vmem:[#allocation5 + $0x2e0] ss:$16 sps:$4 sm:$0xff]   ;;  %vm1318_vm0 = vcmask 130048  }
  0x3f   :  { %1363 = vmatprep.subr.bf16.mxu1 %v3418_v1  ;;  %v3422_v4 = vld [vmem:[#allocation5 + $0xc4] ss:$16 sps:$4 sm:$0xff]   ;;  %1323 = vmatpush1.bf16.msra.mxu0 %v3420_v2  ;;  %v3426_v6 = vld [vmem:[#allocation5 + $0xc0] ss:$16 sps:$4 sm:$0xff]  }
  0x40   :  { %1364 = vmatpush1.bf16.msra.mxu1 %v3421_v3  ;;  %v3424_v5 = vld [vmem:[#allocation5 + $0x2c4] ss:$16 sps:$4 sm:$0xff]   ;;  %1324 = vmatprep.subr.bf16.mxu0 %v3422_v4  ;;  %v3427_v7 = vld [vmem:[#allocation5 + $0x2c0] ss:$16 sps:$4 sm:$0xff]  }
  0x41   :  { %1365 = vmatprep.subr.bf16.mxu1 %v3424_v5  ;;  %v3428_v8 = vld [vmem:[#allocation5 + $0xa4] ss:$16 sps:$4 sm:$0xff]   ;;  %v3432_v10 = vld [vmem:[#allocation5 + $0xa0] ss:$16 sps:$4 sm:$0xff]  }
  0x42   :  { %v3430_v9 = vld [vmem:[#allocation5 + $0x2a4] ss:$16 sps:$4 sm:$0xff]   ;;  %v3433_v11 = vld [vmem:[#allocation5 + $0x2a0] ss:$16 sps:$4 sm:$0xff]  }
  0x43   :  { %1325 = vmatpush1.bf16.msra.mxu0 %v3426_v6  ;;  %v3434_v12 = vld [vmem:[#allocation5 + $0x84] ss:$16 sps:$4 sm:$0xff]   ;;  %v3438_v14 = vld [vmem:[#allocation5 + $0x80] ss:$16 sps:$4 sm:$0xff]  }
  0x44   :  { %1366 = vmatpush1.bf16.msra.mxu1 %v3427_v7  ;;  %1326 = vmatprep.subr.bf16.mxu0 %v3428_v8  ;;  %v3436_v13 = vld [vmem:[#allocation5 + $0x284] ss:$16 sps:$4 sm:$0xff]   ;;  %v3439_v15 = vld [vmem:[#allocation5 + $0x280] ss:$16 sps:$4 sm:$0xff]  }
  0x45   :  { %1367 = vmatprep.subr.bf16.mxu1 %v3430_v9  ;;  %v3440_v16 = vld [vmem:[#allocation5 + $0x64] ss:$16 sps:$4 sm:$0xff]   ;;  %v3444_v18 = vld [vmem:[#allocation5 + $0x60] ss:$16 sps:$4 sm:$0xff]  }
  0x46   :  { %v3442_v17 = vld [vmem:[#allocation5 + $0x264] ss:$16 sps:$4 sm:$0xff]   ;;  %v3445_v19 = vld [vmem:[#allocation5 + $0x260] ss:$16 sps:$4 sm:$0xff]  }
  0x47   :  { %1327 = vmatpush1.bf16.msra.mxu0 %v3432_v10  ;;  %v3446_v20 = vld [vmem:[#allocation5 + $0x44] ss:$16 sps:$4 sm:$0xff]   ;;  %v3450_v22 = vld [vmem:[#allocation5 + $0x40] ss:$16 sps:$4 sm:$0xff]  }
  0x48   :  { %1368 = vmatpush1.bf16.msra.mxu1 %v3433_v11  ;;  %1328 = vmatprep.subr.bf16.mxu0 %v3434_v12  ;;  %v3448_v21 = vld [vmem:[#allocation5 + $0x244] ss:$16 sps:$4 sm:$0xff]   ;;  %v3451_v23 = vld [vmem:[#allocation5 + $0x240] ss:$16 sps:$4 sm:$0xff]   ;;  %v3527_v11 = vld [vmem:[#allocation5 + $0xec] ss:$16 sps:$4 sm:$0xff]  }
  0x49   :  { %1369 = vmatprep.subr.bf16.mxu1 %v3436_v13  ;;  %v3452_v24 = vld [vmem:[#allocation5 + $0x24] ss:$16 sps:$4 sm:$0xff]   ;;  %v3456_v26 = vld [vmem:[#allocation5 + $0x20] ss:$16 sps:$4 sm:$0xff]   ;;  %v4083_v13 = vmov 0  }
  0x4a   :  { %v3454_v25 = vld [vmem:[#allocation5 + $0x224] ss:$16 sps:$4 sm:$0xff]   ;;  %v3457_v27 = vld [vmem:[#allocation5 + $0x220] ss:$16 sps:$4 sm:$0xff]  }
  0x4b   :  { %1329 = vmatpush1.bf16.msra.mxu0 %v3438_v14  ;;  %v3458_v28 = vld [vmem:[#allocation5 + $0x4] ss:$16 sps:$4 sm:$0xff]   ;;  %v3462_v30 = vld [vmem:[#allocation5] ss:$16 sps:$4 sm:$0xff]  }
  0x4c   :  { %1370 = vmatpush1.bf16.msra.mxu1 %v3439_v15  ;;  %1330 = vmatprep.subr.bf16.mxu0 %v3440_v16  ;;  %v3460_v29 = vld [vmem:[#allocation5 + $0x204] ss:$16 sps:$4 sm:$0xff]   ;;  %v3463_v31 = vld [vmem:[#allocation5 + $0x200] ss:$16 sps:$4 sm:$0xff]   ;;  %v3525_v15 = vld [vmem:[#allocation5 + $0xe8] ss:$16 sps:$4 sm:$0xff]  }
  0x4d   :  { %1371 = vmatprep.subr.bf16.mxu1 %v3442_v17  ;;  %v3464_v32 = vld [vmem:[#allocation5 + $0x1e4] ss:$16 sps:$4 sm:$0xff]   ;;  %v3468_v34 = vld [vmem:[#allocation5 + $0x1e0] ss:$16 sps:$4 sm:$0xff]   ;;  %v3531_v17 = vld [vmem:[#allocation2 + $0x18] ss:$0 sps:$4 sm:$0xff]  }
  0x4e   :  { %v3466_v33 = vld [vmem:[#allocation5 + $0x3e4] ss:$16 sps:$4 sm:$0xff]   ;;  %v3469_v35 = vld [vmem:[#allocation5 + $0x3e0] ss:$16 sps:$4 sm:$0xff]  }
  0x4f   :  { %1331 = vmatpush1.bf16.msra.mxu0 %v3444_v18  ;;  %v3470_v36 = vld [vmem:[#allocation5 + $0x1c4] ss:$16 sps:$4 sm:$0xff]   ;;  %v3474_v38 = vld [vmem:[#allocation5 + $0x1c0] ss:$16 sps:$4 sm:$0xff]   ;;  %v3534_v18 = vld [vmem:[#allocation5 + $0xcc] ss:$16 sps:$4 sm:$0xff]  }
  0x50   :  { %1372 = vmatpush1.bf16.msra.mxu1 %v3445_v19  ;;  %1332 = vmatprep.subr.bf16.mxu0 %v3446_v20  ;;  %v3472_v37 = vld [vmem:[#allocation5 + $0x3c4] ss:$16 sps:$4 sm:$0xff]   ;;  %v3475_v39 = vld [vmem:[#allocation5 + $0x3c0] ss:$16 sps:$4 sm:$0xff]   ;;  %v3532_v20 = vld [vmem:[#allocation5 + $0xc8] ss:$16 sps:$4 sm:$0xff]  }
  0x51   :  { %1373 = vmatprep.subr.bf16.mxu1 %v3448_v21  ;;  %v3476_v40 = vld [vmem:[#allocation5 + $0x1a4] ss:$16 sps:$4 sm:$0xff]   ;;  %v3480_v42 = vld [vmem:[#allocation5 + $0x1a0] ss:$16 sps:$4 sm:$0xff]  }
  0x52   :  { %v3478_v41 = vld [vmem:[#allocation5 + $0x3a4] ss:$16 sps:$4 sm:$0xff]   ;;  %v3481_v43 = vld [vmem:[#allocation5 + $0x3a0] ss:$16 sps:$4 sm:$0xff]  }
  0x53   :  { %1333 = vmatpush1.bf16.msra.mxu0 %v3450_v22  ;;  %v3482_v44 = vld [vmem:[#allocation5 + $0x184] ss:$16 sps:$4 sm:$0xff]   ;;  %v93_v48 = vld [vmem:[#allocation2 + $0x8] sm:$0xff] }
  0x54   :  { %1374 = vmatpush1.bf16.msra.mxu1 %v3451_v23  ;;  %1334 = vmatprep.subr.bf16.mxu0 %v3452_v24  ;;  %v3484_v45 = vld [vmem:[#allocation5 + $0x384] ss:$16 sps:$4 sm:$0xff]   ;;  %v3486_v49 = vld [vmem:[#allocation5 + $0x180] ss:$16 sps:$4 sm:$0xff]   ;;  %v4142_v51 = vcombine.high %v93_v48, %v93_v48  ;;  %v4148_v7 = vcombine.low %v93_v48, %v93_v48  ;;  %v3540_v22 = vld [vmem:[#allocation5 + $0xac] ss:$16 sps:$4 sm:$0xff]  }
  0x55   :  { %1375 = vmatprep.subr.bf16.mxu1 %v3454_v25  ;;  %v92_v46 = vld [vmem:[#allocation2] sm:$0xff]  ;;  %v3487_v50 = vld [vmem:[#allocation5 + $0x380] ss:$16 sps:$4 sm:$0xff]   ;;  %v3576_v48 = vld [vmem:[#allocation5 + $0x1ec] ss:$16 sps:$4 sm:$0xff]  }
  0x56   :  { %v4140_v47 = vcombine.high %v92_v46, %v92_v46  ;;  %v3488_v52 = vld [vmem:[#allocation5 + $0x164] ss:$16 sps:$4 sm:$0xff]   ;;  %1395 = vmatprep.mubr.bf16.mxu1 %v4142_v51  ;;  %v3492_v54 = vld [vmem:[#allocation5 + $0x160] ss:$16 sps:$4 sm:$0xff]   ;;  %v4146_v6 = vcombine.low %v92_v46, %v92_v46  ;;  %v3538_v24 = vld [vmem:[#allocation5 + $0xa8] ss:$16 sps:$4 sm:$0xff]  }
  0x57   :  { %1335 = vmatpush1.bf16.msra.mxu0 %v3456_v26  ;;  %v3490_v53 = vld [vmem:[#allocation5 + $0x364] ss:$16 sps:$4 sm:$0xff]   ;;  %v3493_v55 = vld [vmem:[#allocation5 + $0x360] ss:$16 sps:$4 sm:$0xff]   ;;  %v3546_v26 = vld [vmem:[#allocation5 + $0x8c] ss:$16 sps:$4 sm:$0xff]  }
  0x58   :  { %1376 = vmatpush1.bf16.msra.mxu1 %v3457_v27  ;;  %1336 = vmatprep.subr.bf16.mxu0 %v3458_v28  ;;  %v3494_v56 = vld [vmem:[#allocation5 + $0x144] ss:$16 sps:$4 sm:$0xff]   ;;  %v3498_v58 = vld [vmem:[#allocation5 + $0x140] ss:$16 sps:$4 sm:$0xff]   ;;  %v3544_v28 = vld [vmem:[#allocation5 + $0x88] ss:$16 sps:$4 sm:$0xff]  }
  0x59   :  { %1377 = vmatprep.subr.bf16.mxu1 %v3460_v29  ;;  %1354 = vmatprep.mubr.bf16.mxu0 %v4140_v47  ;;  %v3496_v57 = vld [vmem:[#allocation5 + $0x344] ss:$16 sps:$4 sm:$0xff]   ;;  %v3499_v59 = vld [vmem:[#allocation5 + $0x340] ss:$16 sps:$4 sm:$0xff]   ;;  %v3568_v46 = vld [vmem:[#allocation5 + $0x8] ss:$16 sps:$4 sm:$0xff]  }
  0x5a   :  { %v3500_v60 = vld [vmem:[#allocation5 + $0x124] ss:$16 sps:$4 sm:$0xff]   ;;  %v3504_v62 = vld [vmem:[#allocation5 + $0x120] ss:$16 sps:$4 sm:$0xff]  }
  0x5b   :  { %1337 = vmatpush1.bf16.msra.mxu0 %v3462_v30  ;;  %v3502_v61 = vld [vmem:[#allocation5 + $0x324] ss:$16 sps:$4 sm:$0xff]   ;;  %v3505_v63 = vld [vmem:[#allocation5 + $0x320] ss:$16 sps:$4 sm:$0xff]   ;;  %v3552_v30 = vld [vmem:[#allocation5 + $0x6c] ss:$16 sps:$4 sm:$0xff]  }
  0x5c   :  { %1378 = vmatpush1.bf16.msra.mxu1 %v3463_v31  ;;  %1338 = vmatprep.subr.bf16.mxu0 %v3464_v32  ;;  %v3506_v0 = vld [vmem:[#allocation5 + $0x104] ss:$16 sps:$4 sm:$0xff]   ;;  %v3510_v2 = vld [vmem:[#allocation5 + $0x100] ss:$16 sps:$4 sm:$0xff]  }
  0x5d   :  { %1379 = vmatprep.subr.bf16.mxu1 %v3466_v33  ;;  %v3508_v1 = vld [vmem:[#allocation5 + $0x304] ss:$16 sps:$4 sm:$0xff]   ;;  %v3511_v3 = vld [vmem:[#allocation5 + $0x300] ss:$16 sps:$4 sm:$0xff]  }
  0x5e   :  { %v3518_v4 = vld [vmem:[#allocation5 + $0x4e4] ss:$16 sps:$4 sm:$0xff]   ;;  %v3516_v8 = vld [vmem:[#allocation5 + $0x4e0] ss:$16 sps:$4 sm:$0xff]  }
  0x5f   :  { %1339 = vmatpush2.bf16.msra.mxu0 %v3468_v34  ;;  %v3521_v5 = vld [vmem:[#allocation5 + $0x604] ss:$16 sps:$4 sm:$0xff]   ;;  %v3519_v9 = vld [vmem:[#allocation5 + $0x600] ss:$16 sps:$4 sm:$0xff]   ;;  %v3550_v34 = vld [vmem:[#allocation5 + $0x68] ss:$16 sps:$4 sm:$0xff]  }
  0x60   :  { %1380 = vmatpush2.bf16.msra.mxu1 %v3469_v35  ;;  %1340 = vmatprep.subr.bf16.mxu0 %v3470_v36  ;;  %v3524_v10 = vld [vmem:[#allocation5 + $0x4c4] ss:$16 sps:$4 sm:$0xff]   ;;  %v3522_v12 = vld [vmem:[#allocation5 + $0x4c0] ss:$16 sps:$4 sm:$0xff]   ;;  %v3558_v36 = vld [vmem:[#allocation5 + $0x4c] ss:$16 sps:$4 sm:$0xff]  }
  0x61   :  { %1381 = vmatprep.subr.bf16.mxu1 %v3472_v37  ;;  %v3530_v14 = vld [vmem:[#allocation5 + $0x4a4] ss:$16 sps:$4 sm:$0xff]   ;;  %v3528_v16 = vld [vmem:[#allocation5 + $0x4a0] ss:$16 sps:$4 sm:$0xff]  }
  0x62   :  { %v3537_v19 = vld [vmem:[#allocation5 + $0x484] ss:$16 sps:$4 sm:$0xff]   ;;  %v3535_v21 = vld [vmem:[#allocation5 + $0x480] ss:$16 sps:$4 sm:$0xff]  }
  0x63   :  { %1341 = vmatpush2.bf16.msra.mxu0 %v3474_v38  ;;  %v3543_v23 = vld [vmem:[#allocation5 + $0x464] ss:$16 sps:$4 sm:$0xff]   ;;  %v3541_v25 = vld [vmem:[#allocation5 + $0x460] ss:$16 sps:$4 sm:$0xff]   ;;  %v3556_v38 = vld [vmem:[#allocation5 + $0x48] ss:$16 sps:$4 sm:$0xff]  }
  0x64   :  { %1382 = vmatpush2.bf16.msra.mxu1 %v3475_v39  ;;  %1342 = vmatprep.subr.bf16.mxu0 %v3476_v40  ;;  %v3549_v27 = vld [vmem:[#allocation5 + $0x444] ss:$16 sps:$4 sm:$0xff]   ;;  %v3547_v29 = vld [vmem:[#allocation5 + $0x440] ss:$16 sps:$4 sm:$0xff]   ;;  %v3564_v40 = vld [vmem:[#allocation5 + $0x2c] ss:$16 sps:$4 sm:$0xff]  }
  0x65   :  { %1383 = vmatprep.subr.bf16.mxu1 %v3478_v41  ;;  %v3555_v31 = vld [vmem:[#allocation5 + $0x424] ss:$16 sps:$4 sm:$0xff]   ;;  %v3553_v35 = vld [vmem:[#allocation5 + $0x420] ss:$16 sps:$4 sm:$0xff]  }
  0x66   :  { %v4155_v32 = vld [vmem:[#allocation2 + $0x10] sm:$0xff]  ;;  %v3559_v39 = vld [vmem:[#allocation5 + $0x400] ss:$16 sps:$4 sm:$0xff]  }
  0x67   :  { %1343 = vmatpush2.bf16.msra.mxu0 %v3480_v42  ;;  %v4159_v33 = vcombine.high %v4155_v32, %v4155_v32  ;;  %v3561_v37 = vld [vmem:[#allocation5 + $0x404] ss:$16 sps:$4 sm:$0xff]   ;;  %v3562_v42 = vld [vmem:[#allocation5 + $0x28] ss:$16 sps:$4 sm:$0xff]  }
  0x68   :  { %1384 = vmatpush2.bf16.msra.mxu1 %v3481_v43  ;;  %1344 = vmatprep.subr.bf16.mxu0 %v3482_v44  ;;  %v3567_v41 = vld [vmem:[#allocation5 + $0x5e4] ss:$16 sps:$4 sm:$0xff]   ;;  %v3565_v43 = vld [vmem:[#allocation5 + $0x5e0] ss:$16 sps:$4 sm:$0xff]   ;;  %v3570_v44 = vld [vmem:[#allocation5 + $0xc] ss:$16 sps:$4 sm:$0xff]  }
  0x69   :  { %1385 = vmatprep.subr.bf16.mxu1 %v3484_v45  ;;  %v3573_v45 = vld [vmem:[#allocation5 + $0x5c4] ss:$16 sps:$4 sm:$0xff]  }
  0x6b   :  { %1345 = vmatpush2.bf16.msra.mxu0 %v3486_v49  ;;  %v3579_v49 = vld [vmem:[#allocation5 + $0x5a4] ss:$16 sps:$4 sm:$0xff]  }
  0x6c   :  { %1386 = vmatpush2.bf16.msra.mxu1 %v3487_v50  ;;  %1346 = vmatprep.subr.bf16.mxu0 %v3488_v52  ;;  %v3574_v50 = vld [vmem:[#allocation5 + $0x1e8] ss:$16 sps:$4 sm:$0xff]   ;;  %v3577_v52 = vld [vmem:[#allocation5 + $0x5a0] ss:$16 sps:$4 sm:$0xff]  }
  0x6d   :  { %1387 = vmatprep.subr.bf16.mxu1 %v3490_v53  ;;  %v3582_v53 = vld [vmem:[#allocation5 + $0x1cc] ss:$16 sps:$4 sm:$0xff]  }
  0x6f   :  { %1347 = vmatpush2.bf16.msra.mxu0 %v3492_v54  ;;  %v3585_v54 = vld [vmem:[#allocation5 + $0x584] ss:$16 sps:$4 sm:$0xff]  }
  0x70   :  { %1388 = vmatpush2.bf16.msra.mxu1 %v3493_v55  ;;  %1348 = vmatprep.subr.bf16.mxu0 %v3494_v56  ;;  %v3580_v55 = vld [vmem:[#allocation5 + $0x1c8] ss:$16 sps:$4 sm:$0xff]   ;;  %v3583_v56 = vld [vmem:[#allocation5 + $0x580] ss:$16 sps:$4 sm:$0xff]  }
  0x71   :  { %1389 = vmatprep.subr.bf16.mxu1 %v3496_v57  ;;  %v3588_v57 = vld [vmem:[#allocation5 + $0x1ac] ss:$16 sps:$4 sm:$0xff]  }
  0x73   :  { %1349 = vmatpush2.bf16.msra.mxu0 %v3498_v58  ;;  %v3591_v58 = vld [vmem:[#allocation5 + $0x564] ss:$16 sps:$4 sm:$0xff]  }
  0x74   :  { %1390 = vmatpush2.bf16.msra.mxu1 %v3499_v59  ;;  %1350 = vmatprep.subr.bf16.mxu0 %v3500_v60  ;;  %v3586_v59 = vld [vmem:[#allocation5 + $0x1a8] ss:$16 sps:$4 sm:$0xff]   ;;  %v3589_v60 = vld [vmem:[#allocation5 + $0x560] ss:$16 sps:$4 sm:$0xff]  }
  0x75   :  { %1391 = vmatprep.subr.bf16.mxu1 %v3502_v61  ;;  %v3594_v61 = vld [vmem:[#allocation5 + $0x18c] ss:$16 sps:$4 sm:$0xff]  }
  0x77   :  { %1351 = vmatpush2.bf16.msra.mxu0 %v3504_v62  ;;  %v3597_v62 = vld [vmem:[#allocation5 + $0x544] ss:$16 sps:$4 sm:$0xff]  }
  0x78   :  { %1392 = vmatpush2.bf16.msra.mxu1 %v3505_v63  ;;  %1352 = vmatprep.subr.bf16.mxu0 %v3506_v0  ;;  %v3592_v63 = vld [vmem:[#allocation5 + $0x188] ss:$16 sps:$4 sm:$0xff]   ;;  %v3595_v0 = vld [vmem:[#allocation5 + $0x540] ss:$16 sps:$4 sm:$0xff]  }
  0x79   :  { %1393 = vmatprep.subr.bf16.mxu1 %v3508_v1  ;;  %v3600_v1 = vld [vmem:[#allocation5 + $0x16c] ss:$16 sps:$4 sm:$0xff]  }
  0x7b   :  { %1353 = vmatpush2.bf16.msra.mxu0 %v3510_v2  ;;  %v3603_v2 = vld [vmem:[#allocation5 + $0x524] ss:$16 sps:$4 sm:$0xff]  }
  0x7c   :  { %1394 = vmatpush2.bf16.msra.mxu1 %v3511_v3  ;;  %1404 = vmatprep.subr.bf16.mxu0 %v3518_v4  ;;  %v3598_v3 = vld [vmem:[#allocation5 + $0x168] ss:$16 sps:$4 sm:$0xff]   ;;  %v3601_v4 = vld [vmem:[#allocation5 + $0x520] ss:$16 sps:$4 sm:$0xff]  }
  0x7d   :  { %1459 = vmatprep.subr.bf16.mxu1 %v3521_v5  ;;  %v3606_v5 = vld [vmem:[#allocation5 + $0x14c] ss:$16 sps:$4 sm:$0xff]  }
  0x7e   :  { %1355 = vmatmul.mubr.bf16.vlgmr.msra.gmra.mxu0 %v4146_v6 }
  0x7f   :  { %1396 = vmatmul.mubr.bf16.vlgmr.msra.gmra.mxu1 %v4148_v7  ;;  %1405 = vmatpush1.bf16.msra.mxu0 %v3516_v8  ;;  %v3609_v8 = vld [vmem:[#allocation5 + $0x504] ss:$16 sps:$4 sm:$0xff]  }
  0x80   :  { %1460 = vmatpush1.bf16.msra.mxu1 %v3519_v9  ;;  %1406 = vmatprep.subr.bf16.mxu0 %v3524_v10  ;;  %v3604_v9 = vld [vmem:[#allocation5 + $0x148] ss:$16 sps:$4 sm:$0xff]   ;;  %v3607_v10 = vld [vmem:[#allocation5 + $0x500] ss:$16 sps:$4 sm:$0xff]  }
  0x81   :  { %1477 = vmatprep.mubr.bf16.mxu1 %v4083_v13  ;;  %1486 = vmatprep.subr.bf16.mxu1 %v3527_v11  ;;  %v3614_v11 = vld [vmem:[#allocation5 + $0x12c] ss:$16 sps:$4 sm:$0xff]  }
  0x82   :  { %1436 = vmatprep.mubr.bf16.mxu0 %v4159_v33 }
  0x83   :  { %1407 = vmatpush1.bf16.msra.mxu0 %v3522_v12  ;;  %v3617_v12 = vld [vmem:[#allocation5 + $0x2ec] ss:$16 sps:$4 sm:$0xff]  }
  0x84   :  { %1408 = vmatprep.subr.bf16.mxu0 %v3530_v14  ;;  %v4164_v14 = vcombine.low %v4155_v32, %v4155_v32  ;;  %v3639_v32 = vld [vmem:[#allocation5 + $0x268] ss:$16 sps:$4 sm:$0xff]  }
  0x87   :  { %3198 = vmatmul.mubr.msk.bf16.vlgmr.msra.gmra.mxu1 %vm1318_vm0, %v3531_v17  ;;  %1409 = vmatpush1.bf16.msra.mxu0 %v3528_v16  ;;  %v3615_v16 = vld [vmem:[#allocation5 + $0x2e8] ss:$16 sps:$4 sm:$0xff]   ;;  %v3620_v17 = vld [vmem:[#allocation5 + $0x10c] ss:$16 sps:$4 sm:$0xff]  }
  0x88   :  { %1487 = vmatpush1.bf16.msra.mxu1 %v3525_v15  ;;  %1410 = vmatprep.subr.bf16.mxu0 %v3537_v19  ;;  %v3612_v15 = vld [vmem:[#allocation5 + $0x128] ss:$16 sps:$4 sm:$0xff]  }
  0x89   :  { %1488 = vmatprep.subr.bf16.mxu1 %v3534_v18  ;;  %1518 = vmatprep.mubr.bf16.mxu1 %v4140_v47  ;;  %v3571_v47 = vld [vmem:[#allocation5 + $0x5c0] ss:$16 sps:$4 sm:$0xff]   ;;  %v3623_v18 = vld [vmem:[#allocation5 + $0x2cc] ss:$16 sps:$4 sm:$0xff]   ;;  %v3618_v19 = vld [vmem:[#allocation5 + $0x108] ss:$16 sps:$4 sm:$0xff]  }
  0x8b   :  { %1411 = vmatpush1.bf16.msra.mxu0 %v3535_v21  ;;  %v3626_v21 = vld [vmem:[#allocation5 + $0x4ec] ss:$16 sps:$4 sm:$0xff]  }
  0x8c   :  { %1489 = vmatpush1.bf16.msra.mxu1 %v3532_v20  ;;  %1412 = vmatprep.subr.bf16.mxu0 %v3543_v23  ;;  %v3621_v20 = vld [vmem:[#allocation5 + $0x2c8] ss:$16 sps:$4 sm:$0xff]  }
  0x8d   :  { %1490 = vmatprep.subr.bf16.mxu1 %v3540_v22  ;;  %v3629_v22 = vld [vmem:[#allocation5 + $0x2ac] ss:$16 sps:$4 sm:$0xff]   ;;  %v3624_v23 = vld [vmem:[#allocation5 + $0x4e8] ss:$16 sps:$4 sm:$0xff]  }
  0x8f   :  { %1413 = vmatpush1.bf16.msra.mxu0 %v3541_v25  ;;  %v3632_v25 = vld [vmem:[#allocation5 + $0x4cc] ss:$16 sps:$4 sm:$0xff]  }
  0x90   :  { %1491 = vmatpush1.bf16.msra.mxu1 %v3538_v24  ;;  %1414 = vmatprep.subr.bf16.mxu0 %v3549_v27  ;;  %v3627_v24 = vld [vmem:[#allocation5 + $0x2a8] ss:$16 sps:$4 sm:$0xff]  }
  0x91   :  { %1492 = vmatprep.subr.bf16.mxu1 %v3546_v26  ;;  %v3635_v26 = vld [vmem:[#allocation5 + $0x28c] ss:$16 sps:$4 sm:$0xff]   ;;  %v3630_v27 = vld [vmem:[#allocation5 + $0x4c8] ss:$16 sps:$4 sm:$0xff]  }
  0x93   :  { %1415 = vmatpush1.bf16.msra.mxu0 %v3547_v29  ;;  %v3638_v29 = vld [vmem:[#allocation5 + $0x4ac] ss:$16 sps:$4 sm:$0xff]  }
  0x94   :  { %1493 = vmatpush1.bf16.msra.mxu1 %v3544_v28  ;;  %1416 = vmatprep.subr.bf16.mxu0 %v3555_v31  ;;  %v3633_v28 = vld [vmem:[#allocation5 + $0x288] ss:$16 sps:$4 sm:$0xff]  }
  0x95   :  { %1494 = vmatprep.subr.bf16.mxu1 %v3552_v30  ;;  %v3641_v30 = vld [vmem:[#allocation5 + $0x26c] ss:$16 sps:$4 sm:$0xff]   ;;  %v3636_v31 = vld [vmem:[#allocation5 + $0x4a8] ss:$16 sps:$4 sm:$0xff]  }
  0x97   :  { %1417 = vmatpush1.bf16.msra.mxu0 %v3553_v35  ;;  %v3642_v35 = vld [vmem:[#allocation5 + $0x488] ss:$16 sps:$4 sm:$0xff]  }
  0x98   :  { %1495 = vmatpush1.bf16.msra.mxu1 %v3550_v34  ;;  %1418 = vmatprep.subr.bf16.mxu0 %v3561_v37  ;;  %v3647_v34 = vld [vmem:[#allocation5 + $0x24c] ss:$16 sps:$4 sm:$0xff]  }
  0x99   :  { %1496 = vmatprep.subr.bf16.mxu1 %v3558_v36  ;;  %v3650_v36 = vld [vmem:[#allocation5 + $0x46c] ss:$16 sps:$4 sm:$0xff]  }
  0x9a   :  { %v3653_v37 = vld [vmem:[#allocation5 + $0x22c] ss:$16 sps:$4 sm:$0xff]  }
  0x9b   :  { %1419 = vmatpush1.bf16.msra.mxu0 %v3559_v39  ;;  %v3651_v39 = vld [vmem:[#allocation5 + $0x228] ss:$16 sps:$4 sm:$0xff]  }
  0x9c   :  { %1497 = vmatpush1.bf16.msra.mxu1 %v3556_v38  ;;  %1420 = vmatprep.subr.bf16.mxu0 %v3567_v41  ;;  %v3648_v38 = vld [vmem:[#allocation5 + $0x468] ss:$16 sps:$4 sm:$0xff]  }
  0x9d   :  { %1498 = vmatprep.subr.bf16.mxu1 %v3564_v40  ;;  %v3659_v40 = vld [vmem:[#allocation5 + $0x20c] ss:$16 sps:$4 sm:$0xff]   ;;  %v3654_v41 = vld [vmem:[#allocation5 + $0x448] ss:$16 sps:$4 sm:$0xff]  }
  0x9f   :  { %1421 = vmatpush2.bf16.msra.mxu0 %v3565_v43  ;;  %v3662_v43 = vld [vmem:[#allocation5 + $0x42c] ss:$16 sps:$4 sm:$0xff]  }
  0xa0   :  { %1499 = vmatpush1.bf16.msra.mxu1 %v3562_v42  ;;  %1422 = vmatprep.subr.bf16.mxu0 %v3573_v45  ;;  %v3657_v42 = vld [vmem:[#allocation5 + $0x208] ss:$16 sps:$4 sm:$0xff]  }
  0xa1   :  { %1500 = vmatprep.subr.bf16.mxu1 %v3570_v44  ;;  %v3665_v44 = vld [vmem:[#allocation5 + $0x3ec] ss:$16 sps:$4 sm:$0xff]   ;;  %v3660_v45 = vld [vmem:[#allocation5 + $0x428] ss:$16 sps:$4 sm:$0xff]  }
  0xa3   :  { %1423 = vmatpush2.bf16.msra.mxu0 %v3571_v47  ;;  %v3668_v47 = vld [vmem:[#allocation5 + $0x40c] ss:$16 sps:$4 sm:$0xff]  }
  0xa4   :  { %1501 = vmatpush1.bf16.msra.mxu1 %v3568_v46  ;;  %1424 = vmatprep.subr.bf16.mxu0 %v3579_v49  ;;  %v3663_v46 = vld [vmem:[#allocation5 + $0x3e8] ss:$16 sps:$4 sm:$0xff]  }
  0xa5   :  { %1502 = vmatprep.subr.bf16.mxu1 %v3576_v48  ;;  %v3671_v48 = vld [vmem:[#allocation5 + $0x3cc] ss:$16 sps:$4 sm:$0xff]   ;;  %v3666_v49 = vld [vmem:[#allocation5 + $0x408] ss:$16 sps:$4 sm:$0xff]  }
  0xa7   :  { %1425 = vmatpush2.bf16.msra.mxu0 %v3577_v52  ;;  %v3674_v52 = vld [vmem:[#allocation5 + $0x5ec] ss:$16 sps:$4 sm:$0xff]  }
  0xa8   :  { %1503 = vmatpush2.bf16.msra.mxu1 %v3574_v50  ;;  %1426 = vmatprep.subr.bf16.mxu0 %v3585_v54  ;;  %v3669_v50 = vld [vmem:[#allocation5 + $0x3c8] ss:$16 sps:$4 sm:$0xff]  }
  0xa9   :  { %1504 = vmatprep.subr.bf16.mxu1 %v3582_v53  ;;  %v3677_v53 = vld [vmem:[#allocation5 + $0x3ac] ss:$16 sps:$4 sm:$0xff]   ;;  %v3672_v54 = vld [vmem:[#allocation5 + $0x5e8] ss:$16 sps:$4 sm:$0xff]  }
  0xab   :  { %1427 = vmatpush2.bf16.msra.mxu0 %v3583_v56  ;;  %v3680_v56 = vld [vmem:[#allocation5 + $0x5cc] ss:$16 sps:$4 sm:$0xff]  }
  0xac   :  { %1505 = vmatpush2.bf16.msra.mxu1 %v3580_v55  ;;  %1428 = vmatprep.subr.bf16.mxu0 %v3591_v58  ;;  %v3675_v55 = vld [vmem:[#allocation5 + $0x3a8] ss:$16 sps:$4 sm:$0xff]  }
  0xad   :  { %1506 = vmatprep.subr.bf16.mxu1 %v3588_v57  ;;  %v3683_v57 = vld [vmem:[#allocation5 + $0x38c] ss:$16 sps:$4 sm:$0xff]   ;;  %v3678_v58 = vld [vmem:[#allocation5 + $0x5c8] ss:$16 sps:$4 sm:$0xff]  }
  0xaf   :  { %1429 = vmatpush2.bf16.msra.mxu0 %v3589_v60  ;;  %v3686_v60 = vld [vmem:[#allocation5 + $0x5ac] ss:$16 sps:$4 sm:$0xff]  }
  0xb0   :  { %1507 = vmatpush2.bf16.msra.mxu1 %v3586_v59  ;;  %1430 = vmatprep.subr.bf16.mxu0 %v3597_v62  ;;  %v3681_v59 = vld [vmem:[#allocation5 + $0x388] ss:$16 sps:$4 sm:$0xff]  }
  0xb1   :  { %1508 = vmatprep.subr.bf16.mxu1 %v3594_v61  ;;  %v3689_v61 = vld [vmem:[#allocation5 + $0x36c] ss:$16 sps:$4 sm:$0xff]   ;;  %v3684_v62 = vld [vmem:[#allocation5 + $0x5a8] ss:$16 sps:$4 sm:$0xff]  }
  0xb3   :  { %1431 = vmatpush2.bf16.msra.mxu0 %v3595_v0  ;;  %v3692_v0 = vld [vmem:[#allocation5 + $0x58c] ss:$16 sps:$4 sm:$0xff]  }
  0xb4   :  { %1509 = vmatpush2.bf16.msra.mxu1 %v3592_v63  ;;  %1432 = vmatprep.subr.bf16.mxu0 %v3603_v2  ;;  %v3687_v63 = vld [vmem:[#allocation5 + $0x368] ss:$16 sps:$4 sm:$0xff]  }
  0xb5   :  { %1510 = vmatprep.subr.bf16.mxu1 %v3600_v1  ;;  %v3695_v1 = vld [vmem:[#allocation5 + $0x34c] ss:$16 sps:$4 sm:$0xff]   ;;  %v3690_v2 = vld [vmem:[#allocation5 + $0x588] ss:$16 sps:$4 sm:$0xff]  }
  0xb7   :  { %1433 = vmatpush2.bf16.msra.mxu0 %v3601_v4  ;;  %v3698_v4 = vld [vmem:[#allocation5 + $0x56c] ss:$16 sps:$4 sm:$0xff]  }
  0xb8   :  { %1511 = vmatpush2.bf16.msra.mxu1 %v3598_v3  ;;  %1434 = vmatprep.subr.bf16.mxu0 %v3609_v8  ;;  %v3693_v3 = vld [vmem:[#allocation5 + $0x348] ss:$16 sps:$4 sm:$0xff]  }
  0xb9   :  { %1512 = vmatprep.subr.bf16.mxu1 %v3606_v5  ;;  %v3701_v5 = vld [vmem:[#allocation5 + $0x32c] ss:$16 sps:$4 sm:$0xff]   ;;  %v3696_v8 = vld [vmem:[#allocation5 + $0x568] ss:$16 sps:$4 sm:$0xff]  }
  0xbb   :  { %1435 = vmatpush2.bf16.msra.mxu0 %v3607_v10  ;;  %v3704_v10 = vld [vmem:[#allocation5 + $0x54c] ss:$16 sps:$4 sm:$0xff]  }
  0xbc   :  { %1513 = vmatpush2.bf16.msra.mxu1 %v3604_v9  ;;  %1527 = vmatprep.subr.bf16.mxu0 %v3617_v12  ;;  %v3699_v9 = vld [vmem:[#allocation5 + $0x328] ss:$16 sps:$4 sm:$0xff]  }
  0xbd   :  { %1514 = vmatprep.subr.bf16.mxu1 %v3614_v11  ;;  %v3707_v11 = vld [vmem:[#allocation5 + $0x30c] ss:$16 sps:$4 sm:$0xff]   ;;  %v3702_v12 = vld [vmem:[#allocation5 + $0x548] ss:$16 sps:$4 sm:$0xff]  }
  0xbe   :  { %1437 = vmatmul.mubr.bf16.vlgmr.msra.gmra.mxu0 %v4164_v14 }
  0xbf   :  { %1528 = vmatpush1.bf16.msra.mxu0 %v3615_v16  ;;  %1559 = vmatprep.mubr.bf16.mxu0 %v4142_v51  ;;  %v3644_v51 = vld [vmem:[#allocation5 + $0x48c] ss:$16 sps:$4 sm:$0xff]  }
  0xc0   :  { %1515 = vmatpush2.bf16.msra.mxu1 %v3612_v15  ;;  %1529 = vmatprep.subr.bf16.mxu0 %v3623_v18  ;;  %v3705_v15 = vld [vmem:[#allocation5 + $0x308] ss:$16 sps:$4 sm:$0xff]   ;;  %v3710_v16 = vld [vmem:[#allocation5 + $0x52c] ss:$16 sps:$4 sm:$0xff]  }
  0xc1   :  { %1516 = vmatprep.subr.bf16.mxu1 %v3620_v17  ;;  %v3713_v17 = vld [vmem:[#allocation5 + $0x60c] ss:$16 sps:$4 sm:$0xff]   ;;  %v3708_v18 = vld [vmem:[#allocation5 + $0x528] ss:$16 sps:$4 sm:$0xff]  }
  0xc3   :  { %1530 = vmatpush1.bf16.msra.mxu0 %v3621_v20  ;;  %v3716_v20 = vld [vmem:[#allocation5 + $0x50c] ss:$16 sps:$4 sm:$0xff]  }
  0xc4   :  { %1517 = vmatpush2.bf16.msra.mxu1 %v3618_v19  ;;  %1531 = vmatprep.subr.bf16.mxu0 %v3629_v22  ;;  %v3711_v19 = vld [vmem:[#allocation5 + $0x608] ss:$16 sps:$4 sm:$0xff]  }
  0xc5   :  { %1568 = vmatprep.subr.bf16.mxu1 %v3626_v21  ;;  %v3719_v21 = vld [vmem:[#allocation8 + $0xe4] ss:$16 sps:$4 sm:$0xff]  }
  0xc6   :  { %v3714_v22 = vld [vmem:[#allocation5 + $0x508] ss:$16 sps:$4 sm:$0xff]  }
  0xc7   :  { %1519 = vmatmul.mubr.bf16.vlgmr.msra.gmra.mxu1 %v4146_v6  ;;  %1532 = vmatpush1.bf16.msra.mxu0 %v3627_v24  ;;  %v3645_v6 = vld [vmem:[#allocation5 + $0x248] ss:$16 sps:$4 sm:$0xff]  }
  0xc8   :  { %1569 = vmatpush1.bf16.msra.mxu1 %v3624_v23  ;;  %1533 = vmatprep.subr.bf16.mxu0 %v3635_v26  ;;  %v3717_v23 = vld [vmem:[#allocation8 + $0xe0] ss:$16 sps:$4 sm:$0xff]   ;;  %v3722_v24 = vld [vmem:[#allocation8 + $0xc4] ss:$16 sps:$4 sm:$0xff]   ;;  %v3945_v26 = vld [vmem:[#allocation2 + $0x18] ss:$0 sps:$4 sm:$0xff]  }
  0xc9   :  { %1570 = vmatprep.subr.bf16.mxu1 %v3632_v25  ;;  %1600 = vmatprep.mubr.bf16.mxu1 %v4159_v33  ;;  %v3656_v33 = vld [vmem:[#allocation5 + $0x44c] ss:$16 sps:$4 sm:$0xff]   ;;  %v3720_v25 = vld [vmem:[#allocation8 + $0xc0] ss:$16 sps:$4 sm:$0xff]  }
  0xcb   :  { %1534 = vmatpush1.bf16.msra.mxu0 %v3633_v28  ;;  %v3728_v28 = vld [vmem:[#allocation8 + $0x84] ss:$16 sps:$4 sm:$0xff]  }
  0xcc   :  { %1571 = vmatpush1.bf16.msra.mxu1 %v3630_v27  ;;  %1535 = vmatprep.subr.bf16.mxu0 %v3641_v30  ;;  %v3725_v27 = vld [vmem:[#allocation8 + $0xa4] ss:$16 sps:$4 sm:$0xff]  }
  0xcd   :  { %1572 = vmatprep.subr.bf16.mxu1 %v3638_v29  ;;  %v3726_v29 = vld [vmem:[#allocation8 + $0x80] ss:$16 sps:$4 sm:$0xff]   ;;  %v3773_v30 = vld [vmem:[#allocation8 + $0x2e4] ss:$16 sps:$4 sm:$0xff]  }
  0xcf   :  { %1536 = vmatpush1.bf16.msra.mxu0 %v3639_v32  ;;  %v3777_v32 = vld [vmem:[#allocation8 + $0x2c0] ss:$16 sps:$4 sm:$0xff]  }
  0xd0   :  { %1573 = vmatpush1.bf16.msra.mxu1 %v3636_v31  ;;  %1537 = vmatprep.subr.bf16.mxu0 %v3647_v34  ;;  %v3731_v31 = vld [vmem:[#allocation8 + $0x64] ss:$16 sps:$4 sm:$0xff]  }
  0xd1   :  { %1574 = vmatprep.subr.bf16.mxu1 %v3644_v51  ;;  %v3779_v51 = vld [vmem:[#allocation8 + $0x2c4] ss:$16 sps:$4 sm:$0xff]  }
  0xd2   :  { %v3734_v34 = vld [vmem:[#allocation8 + $0x44] ss:$16 sps:$4 sm:$0xff]  }
  0xd3   :  { %1538 = vmatpush1.bf16.msra.mxu0 %v3645_v6  ;;  %v3783_v6 = vld [vmem:[#allocation8 + $0x2a0] ss:$16 sps:$4 sm:$0xff]  }
  0xd4   :  { %1575 = vmatpush1.bf16.msra.mxu1 %v3642_v35  ;;  %1539 = vmatprep.subr.bf16.mxu0 %v3653_v37  ;;  %v3732_v35 = vld [vmem:[#allocation8 + $0x40] ss:$16 sps:$4 sm:$0xff]   ;;  %v3737_v37 = vld [vmem:[#allocation8 + $0x24] ss:$16 sps:$4 sm:$0xff]  }
  0xd5   :  { %1576 = vmatprep.subr.bf16.mxu1 %v3650_v36  ;;  %v3785_v36 = vld [vmem:[#allocation8 + $0x2a4] ss:$16 sps:$4 sm:$0xff]  }
  0xd7   :  { %1540 = vmatpush1.bf16.msra.mxu0 %v3651_v39  ;;  %v3789_v39 = vld [vmem:[#allocation8 + $0x280] ss:$16 sps:$4 sm:$0xff]  }
  0xd8   :  { %1577 = vmatpush1.bf16.msra.mxu1 %v3648_v38  ;;  %1541 = vmatprep.subr.bf16.mxu0 %v3659_v40  ;;  %v3735_v38 = vld [vmem:[#allocation8 + $0x20] ss:$16 sps:$4 sm:$0xff]   ;;  %v3740_v40 = vld [vmem:[#allocation8 + $0x4] ss:$16 sps:$4 sm:$0xff]  }
  0xd9   :  { %1578 = vmatprep.subr.bf16.mxu1 %v3656_v33  ;;  %v3791_v33 = vld [vmem:[#allocation8 + $0x284] ss:$16 sps:$4 sm:$0xff]  }
  0xdb   :  { %1542 = vmatpush1.bf16.msra.mxu0 %v3657_v42  ;;  %v3795_v42 = vld [vmem:[#allocation8 + $0x260] ss:$16 sps:$4 sm:$0xff]  }
  0xdc   :  { %1579 = vmatpush1.bf16.msra.mxu1 %v3654_v41  ;;  %1543 = vmatprep.subr.bf16.mxu0 %v3665_v44  ;;  %v3738_v41 = vld [vmem:[#allocation8] ss:$16 sps:$4 sm:$0xff]   ;;  %v3743_v44 = vld [vmem:[#allocation8 + $0x1e4] ss:$16 sps:$4 sm:$0xff]  }
  0xdd   :  { %1580 = vmatprep.subr.bf16.mxu1 %v3662_v43  ;;  %v3797_v43 = vld [vmem:[#allocation8 + $0x264] ss:$16 sps:$4 sm:$0xff]  }
  0xdf   :  { %1544 = vmatpush2.bf16.msra.mxu0 %v3663_v46  ;;  %v3801_v46 = vld [vmem:[#allocation8 + $0x240] ss:$16 sps:$4 sm:$0xff]  }
  0xe0   :  { %1581 = vmatpush1.bf16.msra.mxu1 %v3660_v45  ;;  %1545 = vmatprep.subr.bf16.mxu0 %v3671_v48  ;;  %v3741_v45 = vld [vmem:[#allocation8 + $0x1e0] ss:$16 sps:$4 sm:$0xff]   ;;  %v3746_v48 = vld [vmem:[#allocation8 + $0x1c4] ss:$16 sps:$4 sm:$0xff]  }
  0xe1   :  { %1582 = vmatprep.subr.bf16.mxu1 %v3668_v47  ;;  %v3803_v47 = vld [vmem:[#allocation8 + $0x244] ss:$16 sps:$4 sm:$0xff]  }
  0xe3   :  { %1546 = vmatpush2.bf16.msra.mxu0 %v3669_v50  ;;  %v3807_v50 = vld [vmem:[#allocation8 + $0x220] ss:$16 sps:$4 sm:$0xff]  }
  0xe4   :  { %1583 = vmatpush1.bf16.msra.mxu1 %v3666_v49  ;;  %1547 = vmatprep.subr.bf16.mxu0 %v3677_v53  ;;  %v3744_v49 = vld [vmem:[#allocation8 + $0x1c0] ss:$16 sps:$4 sm:$0xff]   ;;  %v3749_v53 = vld [vmem:[#allocation8 + $0x1a4] ss:$16 sps:$4 sm:$0xff]  }
  0xe5   :  { %1584 = vmatprep.subr.bf16.mxu1 %v3674_v52  ;;  %v3809_v52 = vld [vmem:[#allocation8 + $0x224] ss:$16 sps:$4 sm:$0xff]  }
  0xe7   :  { %1548 = vmatpush2.bf16.msra.mxu0 %v3675_v55  ;;  %v3813_v55 = vld [vmem:[#allocation8 + $0x200] ss:$16 sps:$4 sm:$0xff]  }
  0xe8   :  { %1585 = vmatpush2.bf16.msra.mxu1 %v3672_v54  ;;  %1549 = vmatprep.subr.bf16.mxu0 %v3683_v57  ;;  %v3747_v54 = vld [vmem:[#allocation8 + $0x1a0] ss:$16 sps:$4 sm:$0xff]   ;;  %v3752_v57 = vld [vmem:[#allocation8 + $0x184] ss:$16 sps:$4 sm:$0xff]  }
  0xe9   :  { %1586 = vmatprep.subr.bf16.mxu1 %v3680_v56  ;;  %v3815_v56 = vld [vmem:[#allocation8 + $0x204] ss:$16 sps:$4 sm:$0xff]  }
  0xeb   :  { %1550 = vmatpush2.bf16.msra.mxu0 %v3681_v59  ;;  %v3819_v59 = vld [vmem:[#allocation8 + $0x3e0] ss:$16 sps:$4 sm:$0xff]  }
  0xec   :  { %1587 = vmatpush2.bf16.msra.mxu1 %v3678_v58  ;;  %1551 = vmatprep.subr.bf16.mxu0 %v3689_v61  ;;  %v3750_v58 = vld [vmem:[#allocation8 + $0x180] ss:$16 sps:$4 sm:$0xff]   ;;  %v3755_v61 = vld [vmem:[#allocation8 + $0x164] ss:$16 sps:$4 sm:$0xff]  }
  0xed   :  { %1588 = vmatprep.subr.bf16.mxu1 %v3686_v60  ;;  %v3821_v60 = vld [vmem:[#allocation8 + $0x3e4] ss:$16 sps:$4 sm:$0xff]  }
  0xef   :  { %1552 = vmatpush2.bf16.msra.mxu0 %v3687_v63  ;;  %v3825_v63 = vld [vmem:[#allocation8 + $0x3c0] ss:$16 sps:$4 sm:$0xff]  }
  0xf0   :  { %1589 = vmatpush2.bf16.msra.mxu1 %v3684_v62  ;;  %1553 = vmatprep.subr.bf16.mxu0 %v3695_v1  ;;  %v3753_v62 = vld [vmem:[#allocation8 + $0x160] ss:$16 sps:$4 sm:$0xff]   ;;  %v3758_v1 = vld [vmem:[#allocation8 + $0x144] ss:$16 sps:$4 sm:$0xff]  }
  0xf1   :  { %1590 = vmatprep.subr.bf16.mxu1 %v3692_v0  ;;  %v3827_v0 = vld [vmem:[#allocation8 + $0x3c4] ss:$16 sps:$4 sm:$0xff]  }
  0xf3   :  { %1554 = vmatpush2.bf16.msra.mxu0 %v3693_v3  ;;  %v3831_v3 = vld [vmem:[#allocation8 + $0x3a0] ss:$16 sps:$4 sm:$0xff]  }
  0xf4   :  { %1591 = vmatpush2.bf16.msra.mxu1 %v3690_v2  ;;  %1555 = vmatprep.subr.bf16.mxu0 %v3701_v5  ;;  %v3756_v2 = vld [vmem:[#allocation8 + $0x140] ss:$16 sps:$4 sm:$0xff]   ;;  %v3761_v5 = vld [vmem:[#allocation8 + $0x124] ss:$16 sps:$4 sm:$0xff]  }
  0xf5   :  { %1592 = vmatprep.subr.bf16.mxu1 %v3698_v4  ;;  %v3833_v4 = vld [vmem:[#allocation8 + $0x3a4] ss:$16 sps:$4 sm:$0xff]  }
  0xf7   :  { %1556 = vmatpush2.bf16.msra.mxu0 %v3699_v9  ;;  %v3837_v9 = vld [vmem:[#allocation8 + $0x380] ss:$16 sps:$4 sm:$0xff]  }
  0xf8   :  { %1593 = vmatpush2.bf16.msra.mxu1 %v3696_v8  ;;  %1557 = vmatprep.subr.bf16.mxu0 %v3707_v11  ;;  %v3759_v8 = vld [vmem:[#allocation8 + $0x120] ss:$16 sps:$4 sm:$0xff]   ;;  %v3764_v11 = vld [vmem:[#allocation8 + $0x104] ss:$16 sps:$4 sm:$0xff]  }
  0xf9   :  { %1594 = vmatprep.subr.bf16.mxu1 %v3704_v10  ;;  %v3839_v10 = vld [vmem:[#allocation8 + $0x384] ss:$16 sps:$4 sm:$0xff]  }
  0xfb   :  { %1558 = vmatpush2.bf16.msra.mxu0 %v3705_v15 }
  0xfc   :  { %1595 = vmatpush2.bf16.msra.mxu1 %v3702_v12  ;;  %1623 = vmatprep.subr.bf16.mxu0 %v3713_v17  ;;  %v3845_v17 = vld [vmem:[#allocation8 + $0x364] ss:$16 sps:$4 sm:$0xff]  }
  0xfd   :  { %1596 = vmatprep.subr.bf16.mxu1 %v3710_v16  ;;  %v3762_v16 = vld [vmem:[#allocation8 + $0x100] ss:$16 sps:$4 sm:$0xff]  }
  0xfe   :  { %1560 = vmatmul.mubr.bf16.vlgmr.msra.gmra.mxu0 %v4148_v7  ;;  %v3723_v7 = vld [vmem:[#allocation8 + $0xa0] ss:$16 sps:$4 sm:$0xff]  }
  0xff   :  { %1624 = vmatpush1.bf16.msra.mxu0 %v3711_v19  ;;  %1641 = vmatprep.mubr.bf16.mxu0 %v4083_v13  ;;  %v3771_v13 = vld [vmem:[#allocation8 + $0x2e0] ss:$16 sps:$4 sm:$0xff]  }
 0x100   :  { %1597 = vmatpush2.bf16.msra.mxu1 %v3708_v18  ;;  %2448 = vmatprep.subr.bf16.mxu0 %v3719_v21  ;;  %v3843_v21 = vld [vmem:[#allocation8 + $0x360] ss:$16 sps:$4 sm:$0xff]  }
 0x101   :  { %1598 = vmatprep.subr.bf16.mxu1 %v3716_v20  ;;  %v3767_v20 = vld [vmem:[#allocation8 + $0xec] ss:$16 sps:$4 sm:$0xff]  }
 0x104   :  { %1599 = vmatpush2.bf16.msra.mxu1 %v3714_v22 }
 0x105   :  { %2489 = vmatprep.subr.bf16.mxu1 %v3773_v30 }
 0x106   :  { %3199 = vmatmul.mubr.msk.bf16.vlgmr.msra.gmra.mxu0 %vm1318_vm0, %v3945_v26 }
 0x107   :  { %1601 = vmatmul.mubr.bf16.vlgmr.msra.gmra.mxu1 %v4164_v14  ;;  %2449 = vmatpush1.bf16.msra.mxu0 %v3717_v23  ;;  %v3729_v14 = vld [vmem:[#allocation8 + $0x60] ss:$16 sps:$4 sm:$0xff]  }
 0x108   :  { %2450 = vmatprep.subr.bf16.mxu0 %v3722_v24  ;;  %2490 = vmatpush1.bf16.msra.mxu1 %v3771_v13  ;;  %v3851_v24 = vld [vmem:[#allocation8 + $0x344] ss:$16 sps:$4 sm:$0xff]   ;;  %v3855_v13 = vld [vmem:[#allocation8 + $0x320] ss:$16 sps:$4 sm:$0xff]  }
 0x109   :  { %2491 = vmatprep.subr.bf16.mxu1 %v3779_v51  ;;  %v3863_v51 = vld [vmem:[#allocation8 + $0x2ec] ss:$16 sps:$4 sm:$0xff]  }
 0x10b   :  { %2451 = vmatpush1.bf16.msra.mxu0 %v3720_v25 }
 0x10c   :  { %2452 = vmatprep.subr.bf16.mxu0 %v3725_v27  ;;  %2492 = vmatpush1.bf16.msra.mxu1 %v3777_v32  ;;  %v3849_v27 = vld [vmem:[#allocation8 + $0x340] ss:$16 sps:$4 sm:$0xff]  }
 0x10d   :  { %2493 = vmatprep.subr.bf16.mxu1 %v3785_v36  ;;  %v3858_v32 = vld [vmem:[#allocation8 + $0x300] ss:$16 sps:$4 sm:$0xff]   ;;  %v4178_v36 = vld [vmem:[#allocation7] sm:$0xf] }
 0x10f   :  { %2453 = vmatpush1.bf16.msra.mxu0 %v3723_v7 }
 0x110   :  { %2454 = vmatprep.subr.bf16.mxu0 %v3728_v28  ;;  %2494 = vmatpush1.bf16.msra.mxu1 %v3783_v6  ;;  %v3857_v28 = vld [vmem:[#allocation8 + $0x324] ss:$16 sps:$4 sm:$0xff]  }
 0x111   :  { %2495 = vmatprep.subr.bf16.mxu1 %v3791_v33 }
 0x113   :  { %2455 = vmatpush1.bf16.msra.mxu0 %v3726_v29 }
 0x114   :  { %2456 = vmatprep.subr.bf16.mxu0 %v3731_v31  ;;  %2496 = vmatpush1.bf16.msra.mxu1 %v3789_v39  ;;  %v3860_v31 = vld [vmem:[#allocation8 + $0x304] ss:$16 sps:$4 sm:$0xff]  }
 0x115   :  { %2497 = vmatprep.subr.bf16.mxu1 %v3797_v43 }
 0x117   :  { %2457 = vmatpush1.bf16.msra.mxu0 %v3729_v14 }
 0x118   :  { %2458 = vmatprep.subr.bf16.mxu0 %v3734_v34  ;;  %2498 = vmatpush1.bf16.msra.mxu1 %v3795_v42  ;;  %v294_v34 = vlaneseq }
 0x119   :  { %2499 = vmatprep.subr.bf16.mxu1 %v3803_v47 }
 0x11b   :  { %2459 = vmatpush1.bf16.msra.mxu0 %v3732_v35  ;;  %v4175_v35 = vshrl.u32 %v294_v34, 7 }
 0x11c   :  { %2460 = vmatprep.subr.bf16.mxu0 %v3737_v37  ;;  %2500 = vmatpush1.bf16.msra.mxu1 %v3801_v46 }
 0x11d   :  { %2501 = vmatprep.subr.bf16.mxu1 %v3809_v52  ;;  %v296_v6 = vsub.s32 0, %v4175_v35  ;;  %v300_v37 = vsub.s32 1, %v4175_v35 }
 0x11f   :  { %2461 = vmatpush1.bf16.msra.mxu0 %v3735_v38  ;;  %v297_v38 = vrot.slane %v4178_v36, %v296_v6  ;;  %v301_v39 = vrot.slane %v4178_v36, %v300_v37 }
 0x120   :  { %2462 = vmatprep.subr.bf16.mxu0 %v3740_v40  ;;  %2502 = vmatpush1.bf16.msra.mxu1 %v3807_v50 }
 0x121   :  { %2503 = vmatprep.subr.bf16.mxu1 %v3815_v56  ;;  %v3765_v56 = vld [vmem:[#allocation8 + $0xe8] ss:$16 sps:$4 sm:$0xff]  }
 0x123   :  { %2463 = vmatpush1.bf16.msra.mxu0 %v3738_v41 }
 0x124   :  { %2464 = vmatprep.subr.bf16.mxu0 %v3743_v44  ;;  %2504 = vmatpush1.bf16.msra.mxu1 %v3813_v55 }
 0x125   :  { %2505 = vmatprep.subr.bf16.mxu1 %v3821_v60 }
 0x127   :  { %2465 = vmatpush2.bf16.msra.mxu0 %v3741_v45 }
 0x128   :  { %2466 = vmatprep.subr.bf16.mxu0 %v3746_v48  ;;  %2506 = vmatpush2.bf16.msra.mxu1 %v3819_v59  ;;  %v3770_v59 = vld [vmem:[#allocation8 + $0xcc] ss:$16 sps:$4 sm:$0xff]  }
 0x129   :  { %2507 = vmatprep.subr.bf16.mxu1 %v3827_v0  ;;  %v3774_v0 = vld [vmem:[#allocation8 + $0xa8] ss:$16 sps:$4 sm:$0xff]  }
 0x12b   :  { %2467 = vmatpush2.bf16.msra.mxu0 %v3744_v49 }
 0x12c   :  { %2468 = vmatprep.subr.bf16.mxu0 %v3749_v53  ;;  %2508 = vmatpush2.bf16.msra.mxu1 %v3825_v63  ;;  %v3776_v63 = vld [vmem:[#allocation8 + $0xac] ss:$16 sps:$4 sm:$0xff]  }
 0x12d   :  { %2509 = vmatprep.subr.bf16.mxu1 %v3833_v4  ;;  %v3786_v4 = vld [vmem:[#allocation8 + $0x68] ss:$16 sps:$4 sm:$0xff]  }
 0x12f   :  { %2469 = vmatpush2.bf16.msra.mxu0 %v3747_v54 }
 0x130   :  { %2470 = vmatprep.subr.bf16.mxu0 %v3752_v57  ;;  %2510 = vmatpush2.bf16.msra.mxu1 %v3831_v3  ;;  %v3788_v3 = vld [vmem:[#allocation8 + $0x6c] ss:$16 sps:$4 sm:$0xff]  }
 0x131   :  { %2511 = vmatprep.subr.bf16.mxu1 %v3839_v10  ;;  %v3798_v10 = vld [vmem:[#allocation8 + $0x28] ss:$16 sps:$4 sm:$0xff]  }
 0x133   :  { %2471 = vmatpush2.bf16.msra.mxu0 %v3750_v58 }
 0x134   :  { %2472 = vmatprep.subr.bf16.mxu0 %v3755_v61  ;;  %2512 = vmatpush2.bf16.msra.mxu1 %v3837_v9  ;;  %v3768_v61 = vld [vmem:[#allocation8 + $0xc8] ss:$16 sps:$4 sm:$0xff]   ;;  %v3800_v9 = vld [vmem:[#allocation8 + $0x2c] ss:$16 sps:$4 sm:$0xff]  }
 0x135   :  { %2513 = vmatprep.subr.bf16.mxu1 %v3845_v17  ;;  %v3818_v17 = vld [vmem:[#allocation8 + $0x1cc] ss:$16 sps:$4 sm:$0xff]  }
 0x137   :  { %2473 = vmatpush2.bf16.msra.mxu0 %v3753_v62 }
 0x138   :  { %2474 = vmatprep.subr.bf16.mxu0 %v3758_v1  ;;  %2514 = vmatpush2.bf16.msra.mxu1 %v3843_v21  ;;  %v3782_v1 = vld [vmem:[#allocation8 + $0x8c] ss:$16 sps:$4 sm:$0xff]  }
 0x139   :  { %2515 = vmatprep.subr.bf16.mxu1 %v3851_v24  ;;  %v3830_v21 = vld [vmem:[#allocation8 + $0x18c] ss:$16 sps:$4 sm:$0xff]   ;;  %v3834_v24 = vld [vmem:[#allocation8 + $0x168] ss:$16 sps:$4 sm:$0xff]  }
 0x13b   :  { %2475 = vmatpush2.bf16.msra.mxu0 %v3756_v2  ;;  %v3780_v2 = vld [vmem:[#allocation8 + $0x88] ss:$16 sps:$4 sm:$0xff]  }
 0x13c   :  { %2476 = vmatprep.subr.bf16.mxu0 %v3761_v5  ;;  %2516 = vmatpush2.bf16.msra.mxu1 %v3849_v27  ;;  %v3794_v5 = vld [vmem:[#allocation8 + $0x4c] ss:$16 sps:$4 sm:$0xff]   ;;  %v3840_v27 = vld [vmem:[#allocation8 + $0x148] ss:$16 sps:$4 sm:$0xff]  }
 0x13d   :  { %2517 = vmatprep.subr.bf16.mxu1 %v3857_v28  ;;  %v308_v28 = vsub.s32 3, %v4175_v35 }
 0x13e   :  { %v1356_v12 = vpop.f32.mrf.mxu0 }
 0x13f   :  { %v1397_v15 = vpop.f32.mrf.mxu1  ;;  %2477 = vmatpush2.bf16.msra.mxu0 %v3759_v8  ;;  %v1357_v33 = vadd.f32 %v1356_v12, %v297_v38  ;;  %v3792_v8 = vld [vmem:[#allocation8 + $0x48] ss:$16 sps:$4 sm:$0xff]  }
 0x140   :  { %v1358_v18 = vpop.f32.mrf.mxu0  ;;  %2478 = vmatprep.subr.bf16.mxu0 %v3764_v11  ;;  %2518 = vmatpush2.bf16.msra.mxu1 %v3855_v13  ;;  %v3806_v11 = vld [vmem:[#allocation8 + $0xc] ss:$16 sps:$4 sm:$0xff]   ;;  %v3804_v12 = vld [vmem:[#allocation8 + $0x8] ss:$16 sps:$4 sm:$0xff]  }
 0x141   :  { %v1399_v19 = vpop.f32.mrf.mxu1  ;;  %2519 = vmatprep.subr.bf16.mxu1 %v3860_v31  ;;  %v1359_v40 = vadd.f32 %v1358_v18, %v301_v39  ;;  %v1398_v41 = vadd.f32 %v1397_v15, %v1357_v33  ;;  %v3812_v15 = vld [vmem:[#allocation8 + $0x1ec] ss:$16 sps:$4 sm:$0xff]   ;;  %v3816_v18 = vld [vmem:[#allocation8 + $0x1c8] ss:$16 sps:$4 sm:$0xff]  }
 0x142   :  { %v1360_v22 = vpop.f32.mrf.mxu0  ;;  %v3852_v39 = vld [vmem:[#allocation8 + $0x108] ss:$16 sps:$4 sm:$0xff]  }
 0x143   :  { %v1401_v23 = vpop.f32.mrf.mxu1  ;;  %2479 = vmatpush2.bf16.msra.mxu0 %v3762_v16  ;;  %v1400_v43 = vadd.f32 %v1399_v19, %v1359_v40  ;;  %v3810_v16 = vld [vmem:[#allocation8 + $0x1e8] ss:$16 sps:$4 sm:$0xff]   ;;  %v3824_v19 = vld [vmem:[#allocation8 + $0x1ac] ss:$16 sps:$4 sm:$0xff]  }
 0x144   :  { %v1361_v25 = vpop.f32.mrf.mxu0  ;;  %2530 = vmatprep.subr.bf16.mxu0 %v3767_v20  ;;  %2520 = vmatpush2.bf16.msra.mxu1 %v3858_v32  ;;  %v3822_v20 = vld [vmem:[#allocation8 + $0x1a8] ss:$16 sps:$4 sm:$0xff]   ;;  %v3836_v23 = vld [vmem:[#allocation8 + $0x16c] ss:$16 sps:$4 sm:$0xff]   ;;  %v309_v32 = vrot.slane %v4178_v36, %v308_v28 }
 0x145   :  { %v1402_v26 = vpop.f32.mrf.mxu1  ;;  %2571 = vmatprep.subr.bf16.mxu1 %v3863_v51  ;;  %v3828_v22 = vld [vmem:[#allocation8 + $0x188] ss:$16 sps:$4 sm:$0xff]   ;;  %v3842_v25 = vld [vmem:[#allocation8 + $0x14c] ss:$16 sps:$4 sm:$0xff]  }
 0x146   :  { %v304_v26 = vsub.s32 2, %v4175_v35 }
 0x147   :  { %v1479_v7 = vpop.f32.mrf.mxu1 }
 0x148   :  { %v305_v13 = vrot.slane %v4178_v36, %v304_v26 }
 0x149   :  { %v1481_v29 = vpop.f32.mrf.mxu1 }
 0x14b   :  { %v1483_v30 = vpop.f32.mrf.mxu1 }
 0x14c   :  { %v3846_v30 = vld [vmem:[#allocation8 + $0x128] ss:$16 sps:$4 sm:$0xff]  }
 0x14d   :  { %v1484_v14 = vpop.f32.mrf.mxu1 }
 0x14e   :  { %v3854_v14 = vld [vmem:[#allocation8 + $0x10c] ss:$16 sps:$4 sm:$0xff]  }
 0x17e   :  { %v1438_v42 = vpop.f32.mrf.mxu0 }
 0x17f   :  { %v1439_v44 = vadd.f32 %v1438_v42, %v1398_v41 }
 0x180   :  { %v1440_v45 = vpop.f32.mrf.mxu0 }
 0x181   :  { %v1480_v46 = vadd.f32 %v1479_v7, %v1439_v44  ;;  %v1441_v47 = vadd.f32 %v1440_v45, %v1400_v43  ;;  %v3848_v7 = vld [vmem:[#allocation8 + $0x12c] ss:$16 sps:$4 sm:$0xff]  }
 0x182   :  { %v1442_v48 = vpop.f32.mrf.mxu0 }
 0x183   :  { %v1482_v49 = vadd.f32 %v1481_v29, %v1441_v47  ;;  %v1650_v50 = vmax.f32 %v1480_v46, 0.0 }
 0x184   :  { %v1443_v52 = vpop.f32.mrf.mxu0 }
 0x185   :  { %v1651_v53 = vmax.f32 %v1482_v49, 0.0  ;;  %v4189_v57 = vpack.c.bf16 %v1650_v50, %v1650_v50 }
 0x187   :  { %v4187_v54 = vpop.f32.mrf.mxu1  ;;  %v1655_v55 = vpack.c.bf16 %v1651_v53, %v1651_v53 }
 0x188   :  { %v1521_v38 = vadd.f32 %v4187_v54, %v305_v13  ;;  %v3894_v13 = vld [vmem:[#allocation8 + $0x388] ss:$16 sps:$4 sm:$0xff]  }
 0x189   :  { %v4191_v58 = vpop.f32.mrf.mxu1  ;;  %2480 = vmatprep.mubr.bf16.mxu0 %v1655_v55 }
 0x18a   :  { %2481 = vmatmul.mubr.bf16.vlgmr.msra.gmra.mxu0 %v4189_v57  ;;  %v1523_v40 = vadd.f32 %v4191_v58, %v309_v32  ;;  %v3900_v32 = vld [vmem:[#allocation8 + $0x348] ss:$16 sps:$4 sm:$0xff]  }
 0x18b   :  { %v1524_v60 = vpop.f32.mrf.mxu1  ;;  %2531 = vmatpush1.bf16.msra.mxu0 %v3765_v56  ;;  %2562 = vmatprep.mubr.bf16.mxu0 %v1655_v55 }
 0x18c   :  { %2532 = vmatprep.subr.bf16.mxu0 %v3770_v59  ;;  %v3861_v59 = vld [vmem:[#allocation8 + $0x2e8] ss:$16 sps:$4 sm:$0xff]  }
 0x18d   :  { %v1525_v62 = vpop.f32.mrf.mxu1 }
 0x18e   :  { %v3909_v62 = vld [vmem:[#allocation10 + $0x78] sm:$0xff]  }
 0x18f   :  { %2533 = vmatpush1.bf16.msra.mxu0 %v3768_v61  ;;  %v3866_v61 = vld [vmem:[#allocation8 + $0x2cc] ss:$16 sps:$4 sm:$0xff]  }
 0x190   :  { %2534 = vmatprep.subr.bf16.mxu0 %v3776_v63  ;;  %v3910_v63 = vld [vmem:[#allocation10 + $0x38] sm:$0xff]  }
 0x193   :  { %2535 = vmatpush1.bf16.msra.mxu0 %v3774_v0  ;;  %v3911_v0 = vld [vmem:[#allocation10 + $0x70] sm:$0xff]  }
 0x194   :  { %2536 = vmatprep.subr.bf16.mxu0 %v3782_v1  ;;  %v3869_v1 = vld [vmem:[#allocation8 + $0x2ac] ss:$16 sps:$4 sm:$0xff]  }
 0x197   :  { %2537 = vmatpush1.bf16.msra.mxu0 %v3780_v2  ;;  %v3912_v2 = vld [vmem:[#allocation10 + $0x30] sm:$0xff]  }
 0x198   :  { %2538 = vmatprep.subr.bf16.mxu0 %v3788_v3  ;;  %v3913_v3 = vld [vmem:[#allocation10 + $0x68] sm:$0xff]  }
 0x19b   :  { %2539 = vmatpush1.bf16.msra.mxu0 %v3786_v4  ;;  %v3867_v4 = vld [vmem:[#allocation8 + $0x2a8] ss:$16 sps:$4 sm:$0xff]  }
 0x19c   :  { %2540 = vmatprep.subr.bf16.mxu0 %v3794_v5  ;;  %v3872_v5 = vld [vmem:[#allocation8 + $0x28c] ss:$16 sps:$4 sm:$0xff]  }
 0x19f   :  { %2541 = vmatpush1.bf16.msra.mxu0 %v3792_v8  ;;  %v3914_v8 = vld [vmem:[#allocation10 + $0x28] sm:$0xff]  }
 0x1a0   :  { %2542 = vmatprep.subr.bf16.mxu0 %v3800_v9  ;;  %v3915_v9 = vld [vmem:[#allocation10 + $0x60] sm:$0xff]  }
 0x1a3   :  { %2543 = vmatpush1.bf16.msra.mxu0 %v3798_v10  ;;  %v3870_v10 = vld [vmem:[#allocation8 + $0x288] ss:$16 sps:$4 sm:$0xff]  }
 0x1a4   :  { %2544 = vmatprep.subr.bf16.mxu0 %v3806_v11  ;;  %v3875_v11 = vld [vmem:[#allocation8 + $0x26c] ss:$16 sps:$4 sm:$0xff]  }
 0x1a7   :  { %2545 = vmatpush1.bf16.msra.mxu0 %v3804_v12  ;;  %v3916_v12 = vld [vmem:[#allocation10 + $0x20] sm:$0xff]  }
 0x1a8   :  { %2546 = vmatprep.subr.bf16.mxu0 %v3812_v15  ;;  %v3873_v15 = vld [vmem:[#allocation8 + $0x268] ss:$16 sps:$4 sm:$0xff]  }
 0x1ab   :  { %2547 = vmatpush2.bf16.msra.mxu0 %v3810_v16  ;;  %v3878_v16 = vld [vmem:[#allocation8 + $0x24c] ss:$16 sps:$4 sm:$0xff]  }
 0x1ac   :  { %2548 = vmatprep.subr.bf16.mxu0 %v3818_v17  ;;  %v3876_v17 = vld [vmem:[#allocation8 + $0x248] ss:$16 sps:$4 sm:$0xff]  }
 0x1af   :  { %2549 = vmatpush2.bf16.msra.mxu0 %v3816_v18  ;;  %v3881_v18 = vld [vmem:[#allocation8 + $0x22c] ss:$16 sps:$4 sm:$0xff]  }
 0x1b0   :  { %2550 = vmatprep.subr.bf16.mxu0 %v3824_v19  ;;  %v3879_v19 = vld [vmem:[#allocation8 + $0x228] ss:$16 sps:$4 sm:$0xff]  }
 0x1b3   :  { %2551 = vmatpush2.bf16.msra.mxu0 %v3822_v20  ;;  %v3884_v20 = vld [vmem:[#allocation8 + $0x20c] ss:$16 sps:$4 sm:$0xff]  }
 0x1b4   :  { %2552 = vmatprep.subr.bf16.mxu0 %v3830_v21  ;;  %v3882_v21 = vld [vmem:[#allocation8 + $0x208] ss:$16 sps:$4 sm:$0xff]  }
 0x1b7   :  { %2553 = vmatpush2.bf16.msra.mxu0 %v3828_v22  ;;  %v3887_v22 = vld [vmem:[#allocation8 + $0x3ec] ss:$16 sps:$4 sm:$0xff]  }
 0x1b8   :  { %2554 = vmatprep.subr.bf16.mxu0 %v3836_v23  ;;  %v3885_v23 = vld [vmem:[#allocation8 + $0x3e8] ss:$16 sps:$4 sm:$0xff]  }
 0x1bb   :  { %2555 = vmatpush2.bf16.msra.mxu0 %v3834_v24  ;;  %v3890_v24 = vld [vmem:[#allocation8 + $0x3cc] ss:$16 sps:$4 sm:$0xff]  }
 0x1bc   :  { %2556 = vmatprep.subr.bf16.mxu0 %v3842_v25  ;;  %v3888_v25 = vld [vmem:[#allocation8 + $0x3c8] ss:$16 sps:$4 sm:$0xff]  }
 0x1be   :  { %v1561_v29 = vpop.f32.mrf.mxu0 }
 0x1bf   :  { %2557 = vmatpush2.bf16.msra.mxu0 %v3840_v27  ;;  %v1562_v41 = vadd.f32 %v1561_v29, %v1521_v38  ;;  %v3893_v27 = vld [vmem:[#allocation8 + $0x3ac] ss:$16 sps:$4 sm:$0xff]   ;;  %v3903_v38 = vld [vmem:[#allocation8 + $0x328] ss:$16 sps:$4 sm:$0xff]  }
 0x1c0   :  { %v1563_v31 = vpop.f32.mrf.mxu0  ;;  %2558 = vmatprep.subr.bf16.mxu0 %v3848_v7  ;;  %v3891_v7 = vld [vmem:[#allocation8 + $0x3a8] ss:$16 sps:$4 sm:$0xff]   ;;  %v3896_v29 = vld [vmem:[#allocation8 + $0x38c] ss:$16 sps:$4 sm:$0xff]  }
 0x1c1   :  { %v1564_v44 = vadd.f32 %v1563_v31, %v1523_v40  ;;  %v3897_v31 = vld [vmem:[#allocation8 + $0x368] ss:$16 sps:$4 sm:$0xff]  }
 0x1c2   :  { %v1565_v51 = vpop.f32.mrf.mxu0  ;;  %v3917_v40 = vld [vmem:[#allocation10 + $0x58] sm:$0xff]  }
 0x1c3   :  { %2559 = vmatpush2.bf16.msra.mxu0 %v3846_v30  ;;  %v3899_v30 = vld [vmem:[#allocation8 + $0x36c] ss:$16 sps:$4 sm:$0xff]  }
 0x1c4   :  { %v1566_v33 = vpop.f32.mrf.mxu0  ;;  %2560 = vmatprep.subr.bf16.mxu0 %v3854_v14  ;;  %v3902_v14 = vld [vmem:[#allocation8 + $0x34c] ss:$16 sps:$4 sm:$0xff]  }
 0x1c5   :  { %v3905_v51 = vld [vmem:[#allocation8 + $0x32c] ss:$16 sps:$4 sm:$0xff]   ;;  %v3906_v33 = vld [vmem:[#allocation8 + $0x308] ss:$16 sps:$4 sm:$0xff]  }
 0x1c6   :  { %v1643_v43 = vpop.f32.mrf.mxu0 }
 0x1c7   :  { %v1602_v42 = vpop.f32.mrf.mxu1  ;;  %2561 = vmatpush2.bf16.msra.mxu0 %v3852_v39  ;;  %v3908_v39 = vld [vmem:[#allocation8 + $0x30c] ss:$16 sps:$4 sm:$0xff]  }
 0x1c8   :  { %v1603_v45 = vadd.f32 %v1602_v42, %v1562_v41  ;;  %v1645_v47 = vpop.f32.mrf.mxu0  ;;  %3361 = vmatprep.subr.bf16.mxu0 %v3909_v62  ;;  %v3918_v41 = vld [vmem:[#allocation10 + $0x18] sm:$0xff]   ;;  %v3919_v42 = vld [vmem:[#allocation10 + $0x50] sm:$0xff]  }
 0x1c9   :  { %v1604_v46 = vpop.f32.mrf.mxu1 }
 0x1ca   :  { %v1644_v48 = vadd.f32 %v1643_v43, %v1603_v45  ;;  %v1605_v49 = vadd.f32 %v1604_v46, %v1564_v44  ;;  %2563 = vmatmul.mubr.bf16.vlgmr.msra.gmra.mxu0 %v4189_v57  ;;  %v1647_v50 = vpop.f32.mrf.mxu0  ;;  %v3864_v57 = vld [vmem:[#allocation8 + $0x2c8] ss:$16 sps:$4 sm:$0xff]   ;;  %v3920_v43 = vld [vmem:[#allocation10 + $0x10] sm:$0xff]   ;;  %v3923_v46 = vld [vmem:[#allocation10 + $0x40] sm:$0xff]  }
 0x1cb   :  { %v1606_v36 = vpop.f32.mrf.mxu1  ;;  %3362 = vmatpush3.bf16.msra.mxu0 %v3910_v63  ;;  %v3921_v44 = vld [vmem:[#allocation10 + $0x48] sm:$0xff]   ;;  %v3928_v50 = vld [vmem:[#allocation10 + $0xb0] sm:$0xff]  }
 0x1cc   :  { %v1646_v52 = vadd.f32 %v1645_v47, %v1605_v49  ;;  %v1652_v53 = vmax.f32 %v1644_v48, 0.0  ;;  %v1648_v55 = vpop.f32.mrf.mxu0  ;;  %3363 = vmatprep.subr.bf16.mxu0 %v3911_v0  ;;  %v3922_v45 = vld [vmem:[#allocation10 + $0x8] sm:$0xff]   ;;  %v3924_v47 = vld [vmem:[#allocation10] sm:$0xff]   ;;  %v3925_v48 = vld [vmem:[#allocation10 + $0xf8] sm:$0xff]  }
 0x1cd   :  { %v1607_v54 = vpop.f32.mrf.mxu1  ;;  %v3926_v49 = vld [vmem:[#allocation10 + $0xb8] sm:$0xff]   ;;  %v3927_v36 = vld [vmem:[#allocation10 + $0xf0] sm:$0xff]   ;;  %v3932_v55 = vld [vmem:[#allocation10 + $0xa0] sm:$0xff]  }
 0x1ce   :  { %v1653_v56 = vmax.f32 %v1646_v52, 0.0  ;;  %v4205_v60 = vpack.c.bf16 %v1652_v53, %v1652_v53  ;;  %v3929_v52 = vld [vmem:[#allocation10 + $0xe8] sm:$0xff]   ;;  %v3931_v54 = vld [vmem:[#allocation10 + $0xe0] sm:$0xff]  }
 0x1cf   :  { %3364 = vmatpush3.bf16.msra.mxu0 %v3912_v2  ;;  %v3930_v53 = vld [vmem:[#allocation10 + $0xa8] sm:$0xff]   ;;  %v3939_v2 = vld [vmem:[#allocation10 + $0xc0] sm:$0xff]  }
 0x1d0   :  { %v1657_v58 = vpack.c.bf16 %v1653_v56, %v1653_v56  ;;  %3365 = vmatprep.subr.bf16.mxu0 %v3913_v3  ;;  %v3933_v56 = vld [vmem:[#allocation10 + $0xd8] sm:$0xff]   ;;  %v3940_v3 = vld [vmem:[#allocation10 + $0x80] sm:$0xff]  }
 0x1d2   :  { %2521 = vmatprep.mubr.bf16.mxu1 %v1657_v58 }
 0x1d3   :  { %2522 = vmatmul.mubr.bf16.vlgmr.msra.gmra.mxu1 %v4205_v60  ;;  %3366 = vmatpush3.bf16.msra.mxu0 %v3914_v8 }
 0x1d4   :  { %2572 = vmatpush1.bf16.msra.mxu1 %v3861_v59  ;;  %2603 = vmatprep.mubr.bf16.mxu1 %v1657_v58  ;;  %v3934_v58 = vld [vmem:[#allocation10 + $0x98] sm:$0xff]   ;;  %v3935_v59 = vld [vmem:[#allocation10 + $0xd0] sm:$0xff]  }
 0x1d5   :  { %2573 = vmatprep.subr.bf16.mxu1 %v3866_v61  ;;  %3367 = vmatprep.subr.bf16.mxu0 %v3915_v9 }
 0x1d7   :  { %3368 = vmatpush3.bf16.msra.mxu0 %v3916_v12 }
 0x1d8   :  { %2574 = vmatpush1.bf16.msra.mxu1 %v3864_v57  ;;  %3369 = vmatprep.subr.bf16.mxu0 %v3917_v40  ;;  %v3937_v57 = vld [vmem:[#allocation10 + $0xc8] sm:$0xff]  }
 0x1d9   :  { %2575 = vmatprep.subr.bf16.mxu1 %v3869_v1  ;;  %v3938_v1 = vld [vmem:[#allocation10 + $0x88] sm:$0xff]  }
 0x1db   :  { %3370 = vmatpush3.bf16.msra.mxu0 %v3918_v41 }
 0x1dc   :  { %2576 = vmatpush1.bf16.msra.mxu1 %v3867_v4  ;;  %3371 = vmatprep.subr.bf16.mxu0 %v3919_v42  ;;  %v1786_v4 = vld [vmem:[%s4231_s4] sm:$0xf] }
 0x1dd   :  { %2577 = vmatprep.subr.bf16.mxu1 %v3872_v5  ;;  %v1791_v9 = vrot.slane %v1786_v4, %v296_v6  ;;  %v1799_v6 = vrot.slane %v1786_v4, %v304_v26 }
 0x1df   :  { %3372 = vmatpush3.bf16.msra.mxu0 %v3920_v43 }
 0x1e0   :  { %2578 = vmatpush1.bf16.msra.mxu1 %v3870_v10  ;;  %3373 = vmatprep.subr.bf16.mxu0 %v3921_v44 }
 0x1e1   :  { %2579 = vmatprep.subr.bf16.mxu1 %v3875_v11  ;;  %v1795_v11 = vrot.slane %v1786_v4, %v300_v37  ;;  %v1803_v37 = vrot.slane %v1786_v4, %v308_v28  ;;  %v3328_v28 = vld [vmem:[%s4233_s6] ss:$0 sm:$0xff]  ;;  %s4084_s6 = smov [#allocation11]  }
 0x1e2   :  { %s2984_s28 = sshll.u32 %s4084_s6, 4  ;;  %s2985_s28 = int_to_ptr.vmem [resolvable:$true] %s2984_s28 }
 0x1e3   :  { %3374 = vmatpush3.bf16.msra.mxu0 %v3922_v45  ;;  %v2964_v45 = vand.u32 127, %v294_v34  ;;  %s4046_s29 = scalar_lea.vmem %s2985_s28, 128  ;;  %p4051_p12 = scmp.lt.s32.totalorder %s2985_s28, %s2985_s28 }
 0x1e4   :  { %2580 = vmatpush1.bf16.msra.mxu1 %v3873_v15  ;;  %3375 = vmatprep.subr.bf16.mxu0 %v3923_v46  ;;  %p4047_p11 = scmp.ne.s32.totalorder %s2985_s28, %s4046_s29  ;;  %p4052_p13 = scmp.lt.s32.totalorder %s4046_s29, %s4046_s29 }
 0x1e5   :  { %2581 = vmatprep.subr.bf16.mxu1 %v3878_v16  ;;  %vm2965_vm1 = vcmp.lt.s32.totalorder %v2964_v45, 10 }
 0x1e6   :  { %p4053_p0 = por %p4052_p13, %p4051_p12 }
 0x1e7   :  { %3376 = vmatpush3.bf16.msra.mxu0 %v3924_v47 }
 0x1e8   :  { %2582 = vmatpush1.bf16.msra.mxu1 %v3876_v17  ;;  %p4054_p1 = pnand %p4053_p0, %p4047_p11 }
 0x1e9   :  { %2583 = vmatprep.subr.bf16.mxu1 %v3881_v18 }
 0x1ec   :  { %2584 = vmatpush1.bf16.msra.mxu1 %v3879_v19 }
 0x1ed   :  { %2585 = vmatprep.subr.bf16.mxu1 %v3884_v20 }
 0x1f0   :  { %2586 = vmatpush1.bf16.msra.mxu1 %v3882_v21 }
 0x1f1   :  { %2587 = vmatprep.subr.bf16.mxu1 %v3887_v22 }
 0x1f4   :  { %2588 = vmatpush2.bf16.msra.mxu1 %v3885_v23 }
 0x1f5   :  { %2589 = vmatprep.subr.bf16.mxu1 %v3890_v24 }
 0x1f8   :  { %2590 = vmatpush2.bf16.msra.mxu1 %v3888_v25 }
 0x1f9   :  { %2591 = vmatprep.subr.bf16.mxu1 %v3893_v27 }
 0x1fc   :  { %2592 = vmatpush2.bf16.msra.mxu1 %v3891_v7 }
 0x1fd   :  { %2593 = vmatprep.subr.bf16.mxu1 %v3896_v29 }
 0x200   :  { %2594 = vmatpush2.bf16.msra.mxu1 %v3894_v13 }
 0x201   :  { %2595 = vmatprep.subr.bf16.mxu1 %v3899_v30 }
 0x204   :  { %2596 = vmatpush2.bf16.msra.mxu1 %v3897_v31 }
 0x205   :  { %2597 = vmatprep.subr.bf16.mxu1 %v3902_v14 }
 0x208   :  { %2598 = vmatpush2.bf16.msra.mxu1 %v3900_v32 }
 0x209   :  { %2599 = vmatprep.subr.bf16.mxu1 %v3905_v51 }
 0x20c   :  { %2600 = vmatpush2.bf16.msra.mxu1 %v3903_v38 }
 0x20d   :  { %2601 = vmatprep.subr.bf16.mxu1 %v3908_v39 }
 0x210   :  { %2602 = vmatpush2.bf16.msra.mxu1 %v3906_v33 }
 0x211   :  { %3383 = vmatprep.subr.bf16.mxu1 %v3925_v48 }
 0x213   :  { %2604 = vmatmul.mubr.bf16.vlgmr.msra.gmra.mxu1 %v4205_v60  ;;  %v3936_v60 = vld [vmem:[#allocation10 + $0x90] sm:$0xff]  }
 0x214   :  { %3384 = vmatpush3.bf16.msra.mxu1 %v3926_v49 }
 0x215   :  { %3385 = vmatprep.subr.bf16.mxu1 %v3927_v36 }
 0x218   :  { %3386 = vmatpush3.bf16.msra.mxu1 %v3928_v50 }
 0x219   :  { %3387 = vmatprep.subr.bf16.mxu1 %v3929_v52 }
 0x21c   :  { %3388 = vmatpush3.bf16.msra.mxu1 %v3930_v53 }
 0x21d   :  { %3389 = vmatprep.subr.bf16.mxu1 %v3931_v54 }
 0x220   :  { %3390 = vmatpush3.bf16.msra.mxu1 %v3932_v55 }
 0x221   :  { %3391 = vmatprep.subr.bf16.mxu1 %v3933_v56 }
 0x224   :  { %3392 = vmatpush3.bf16.msra.mxu1 %v3934_v58 }
 0x225   :  { %3393 = vmatprep.subr.bf16.mxu1 %v3935_v59 }
 0x228   :  { %3394 = vmatpush3.bf16.msra.mxu1 %v3936_v60 }
 0x229   :  { %3395 = vmatprep.subr.bf16.mxu1 %v3937_v57 }
 0x22c   :  { %3396 = vmatpush3.bf16.msra.mxu1 %v3938_v1 }
 0x22d   :  { %3397 = vmatprep.subr.bf16.mxu1 %v3939_v2 }
 0x230   :  { %3398 = vmatpush3.bf16.msra.mxu1 %v3940_v3 }
 0x24a   :  { %v2482_v61 = vpop.f32.mrf.mxu0 }
 0x24b   :  { %v2483_v15 = vadd.f32 %v2482_v61, %v1791_v9 }
 0x24c   :  { %v2484_v62 = vpop.f32.mrf.mxu0 }
 0x24d   :  { %v2485_v17 = vadd.f32 %v2484_v62, %v1795_v11 }
 0x24e   :  { %v2486_v63 = vpop.f32.mrf.mxu0 }
 0x250   :  { %v2487_v0 = vpop.f32.mrf.mxu0 }
 0x28a   :  { %v2564_v5 = vpop.f32.mrf.mxu0 }
 0x28b   :  { %v2565_v7 = vadd.f32 %v2564_v5, %v1799_v6 }
 0x28c   :  { %v2566_v8 = vpop.f32.mrf.mxu0 }
 0x28d   :  { %v2567_v13 = vadd.f32 %v2566_v8, %v1803_v37 }
 0x28e   :  { %v2568_v10 = vpop.f32.mrf.mxu0 }
 0x290   :  { %v2569_v12 = vpop.f32.mrf.mxu0 }
 0x293   :  { %v2523_v16 = vpop.f32.mrf.mxu1 }
 0x294   :  { %v2524_v18 = vadd.f32 %v2523_v16, %v2483_v15 }
 0x295   :  { %v2525_v19 = vpop.f32.mrf.mxu1 }
 0x296   :  { %v2526_v20 = vadd.f32 %v2525_v19, %v2485_v17  ;;  %v2612_v21 = vmax.f32 %v2524_v18, 0.0 }
 0x297   :  { %v2527_v22 = vpop.f32.mrf.mxu1 }
 0x298   :  { %v2613_v23 = vmax.f32 %v2526_v20, 0.0  ;;  %v2616_v27 = vpack.c.bf16 %v2612_v21, %v2612_v21 }
 0x299   :  { %v2528_v24 = vpop.f32.mrf.mxu1 }
 0x29a   :  { %v2617_v25 = vpack.c.bf16 %v2613_v23, %v2613_v23 }
 0x29c   :  { %2915 = vmatprep.mubr.bf16.mxu0 %v2617_v25 }
 0x29d   :  { %2916 = vmatmul.mubr.bf16.vlgmr.msra.gmra.mxu0 %v2616_v27 }
 0x2d3   :  { %v2605_v29 = vpop.f32.mrf.mxu1 }
 0x2d4   :  { %v2606_v30 = vadd.f32 %v2605_v29, %v2565_v7 }
 0x2d5   :  { %v2607_v31 = vpop.f32.mrf.mxu1 }
 0x2d6   :  { %v2608_v14 = vadd.f32 %v2607_v31, %v2567_v13  ;;  %v2614_v32 = vmax.f32 %v2606_v30, 0.0 }
 0x2d7   :  { %v2609_v51 = vpop.f32.mrf.mxu1 }
 0x2d8   :  { %v2615_v38 = vmax.f32 %v2608_v14, 0.0  ;;  %v2618_v40 = vpack.c.bf16 %v2614_v32, %v2614_v32 }
 0x2d9   :  { %v2610_v39 = vpop.f32.mrf.mxu1 }
 0x2da   :  { %v2619_v33 = vpack.c.bf16 %v2615_v38, %v2615_v38 }
 0x2dc   :  { %2955 = vmatprep.mubr.bf16.mxu1 %v2619_v33 }
 0x2dd   :  { %2956 = vmatmul.mubr.bf16.vlgmr.msra.gmra.mxu1 %v2618_v40 }
 0x35d   :  { %v3377_v41 = vpop.f32.mrf.mxu0 }
 0x35f   :  { %v3378_v42 = vpop.f32.mrf.mxu0 }
 0x360   :  { %v3379_v35 = vadd.f32 %v3378_v42, %v3377_v41 }
 0x361   :  { %v3380_v26 = vpop.f32.mrf.mxu0 }
 0x362   :  { %v2918_v47 = vadd.f32 %v3379_v35, %v3328_v28 }
 0x363   :  { %v3381_v43 = vpop.f32.mrf.mxu0 }
 0x39d   :  { %v3399_v44 = vpop.f32.mrf.mxu1 }
 0x39f   :  { %v3400_v46 = vpop.f32.mrf.mxu1 }
 0x3a0   :  { %v3401_v48 = vadd.f32 %v3400_v46, %v3399_v44 }
 0x3a1   :  { %v3402_v49 = vpop.f32.mrf.mxu1 }
 0x3a2   :  { %v2958_v36 = vadd.f32 %v3401_v48, %v2918_v47 }
 0x3a3   :  { %v3403_v50 = vpop.f32.mrf.mxu1 }
 0x3a4   :  { %v2966_v52 = vsel %vm2965_vm1, %v2958_v36, -1e+30 }
 0x3a5   :  { %2967 = vmax.xlane.f32.xlu0 %v2966_v52 }
 0x42e   :  { %v2968_v53 = vpop.xlane.xlu0 %2967 }
 0x42f   :  { %v2969_v54 = vsub.f32 %v2966_v52, %v2968_v53 }
 0x431   :  { %v2970_v55 = vmul.f32 1.442695, %v2969_v54 }
 0x433   :  { %3941 = vpow2.f32 %v2970_v55 }
 0x440   :  { %v3942_v56 = vpop.eup %3941 }
 0x441   :  { %2972 = vadd.xlane.f32.xlu0 %v3942_v56 }
 0x4ca   :  { %v2973_v58 = vpop.xlane.xlu0 %2972 }
 0x4cb   :  { %3943 = vlog2.f32 %v2973_v58 }
 0x4d8   :  { %v3944_v59 = vpop.eup %3943 }
 0x4d9   :  { %v2975_v34 = vmul.f32 0.6931472, %v3944_v59 }
 0x4db   :  { %v2976_v60 = vsub.f32 %v2969_v54, %v2975_v34 }
 0x4dd   :  { %2977 = vst [vmem:[#allocation11] sm:$0xff] %v2976_v60 }
 0x4de   :  { %4057 = shalt.err (!%p4054_p1)
}
 0x4df   :  { %2987 = dma.vmem_to_hbm [thread:$0]  %s2985_s28, 128, %s4234_s7, [#allocation4]  }
 0x4e0   :  { %4072 = dma.done.wait [#allocation4], 128  }
 0x4e1   :  { %4073 = vsyncadd [#allocation4], 4294967168 }
 0x4e2   :  { %2991 = vsyncpa [#allocation3], 1 }
 0x4e3   :  { %2992 = vsyncpa [#allocation6], 1 }
 0x4e4   :  { %2993 = vsyncpa [#allocation9], 1 }
 0x4e5   :  { %2994 = vsyncpa [#allocation4], 1 }

</bundles_post_ra>
